<compile_context>
chip_gen: v7x
topology: tpu7x:2x2x1
jax: 0.10.0
libtpu: 0.0.40
codegen_flags: <defaults>
</compile_context>

<pallas_src>
from functools import partial

import jax
import jax.numpy as jnp
from jax.experimental import pallas as pl
from jax.experimental.pallas import tpu as pltpu

IN_DIM = 28 * 28          # 784
K_PAD = 896               # 7 * 128, lane-aligned contraction dim for layer 1
HID = 512
OUT_DIM = 10
OUT_PAD = 128             # lane-dense output width


def _round_up(x, m):
    return ((x + m - 1) // m) * m


def mlp_kernel(x_ref, w1_ref, b1_ref, w2_ref, b2_ref, w3_ref, b3_ref, o_ref):
    """Fused 3-layer MLP forward for one batch tile (all weights resident in VMEM).

    Inputs/weights are bf16 (MXU-native); accumulation, bias-add and ReLU are f32.
    """
    x = x_ref[...]                                                     # (TB, 896) bf16
    h1 = jnp.dot(x, w1_ref[...], preferred_element_type=jnp.float32) + b1_ref[...]
    h1 = jnp.maximum(h1, 0.0).astype(jnp.bfloat16)                     # ReLU, back to bf16 for MXU
    h2 = jnp.dot(h1, w2_ref[...], preferred_element_type=jnp.float32) + b2_ref[...]
    h2 = jnp.maximum(h2, 0.0).astype(jnp.bfloat16)                     # ReLU
    logits = jnp.dot(h2, w3_ref[...], preferred_element_type=jnp.float32) + b3_ref[...]
    o_ref[...] = logits.astype(o_ref.dtype)                            # (TB, 128) f32


def _pick_tile(batch, tile_b):
    """Batch tile: big enough to feed the MXU, small enough to give >= 2 grid steps
    (so the 'parallel' axis can be split across TensorCores on v7x)."""
    b8 = _round_up(batch, 8)
    if b8 >= 16:
        tb = min(tile_b, _round_up(b8 // 2, 8))
    else:
        tb = b8
    return max(tb, 8)


@partial(jax.jit, static_argnames=("tile_b",))
def neural_network_forward(x_nchw, params, *, tile_b=256):
    """x_nchw: (B, 1, 28, 28) float32. Returns logits (B, 10) float32."""
    w1, b1, w2, b2, w3, b3 = params
    B = x_nchw.shape[0]

    # Glue: flatten exactly like nn.Flatten (row-major over C,H,W), cast to bf16.
    x2d = x_nchw.reshape(B, -1).astype(jnp.bfloat16)                   # (B, 784)

    # Pad contraction dim 784 -> 896 with zeros (zero rows in W1 contribute nothing).
    x2d = jnp.pad(x2d, ((0, 0), (0, K_PAD - IN_DIM)))
    w1p = jnp.pad(w1, ((0, K_PAD - IN_DIM), (0, 0))).astype(jnp.bfloat16)   # (896, 512)

    w2b = w2.astype(jnp.bfloat16)                                      # (512, 512)

    # Pad last layer 10 -> 128 outputs for lane-dense stores; slice back after the call.
    w3p = jnp.pad(w3, ((0, 0), (0, OUT_PAD - OUT_DIM))).astype(jnp.bfloat16)  # (512, 128)
    b3p = jnp.pad(b3, ((0, 0), (0, OUT_PAD - OUT_DIM))).astype(jnp.float32)   # (1, 128)

    b1f = b1.astype(jnp.float32)
    b2f = b2.astype(jnp.float32)

    tb = _pick_tile(B, tile_b)
    Bp = _round_up(B, tb)
    if Bp != B:
        x2d = jnp.pad(x2d, ((0, Bp - B), (0, 0)))                      # zero rows are harmless

    grid = (Bp // tb,)
    out = pl.pallas_call(
        mlp_kernel,
        out_shape=jax.ShapeDtypeStruct((Bp, OUT_PAD), jnp.float32),
        grid_spec=pltpu.PrefetchScalarGridSpec(
            num_scalar_prefetch=0,
            grid=grid,
            in_specs=[
                pl.BlockSpec((tb, K_PAD),      lambda i: (i, 0)),      # x tile
                pl.BlockSpec((K_PAD, HID),     lambda i: (0, 0)),      # W1 (resident)
                pl.BlockSpec((1, HID),         lambda i: (0, 0)),      # b1
                pl.BlockSpec((HID, HID),       lambda i: (0, 0)),      # W2 (resident)
                pl.BlockSpec((1, HID),         lambda i: (0, 0)),      # b2
                pl.BlockSpec((HID, OUT_PAD),   lambda i: (0, 0)),      # W3 (padded, resident)
                pl.BlockSpec((1, OUT_PAD),     lambda i: (0, 0)),      # b3 (padded)
            ],
            out_specs=pl.BlockSpec((tb, OUT_PAD), lambda i: (i, 0)),
        ),
        compiler_params=pltpu.CompilerParams(
            dimension_semantics=("parallel",),
        ),
    )(x2d, w1p, b1f, w2b, b2f, w3p, b3p)

    return out[:B, :OUT_DIM]


def init_params(key):
    """Deterministic init mimicking PyTorch's default Linear init (U[-1/sqrt(fan_in), +1/sqrt(fan_in)])."""
    ks = jax.random.split(key, 6)

    def linear(kw, kb, fan_in, fan_out):
        bound = 1.0 / jnp.sqrt(float(fan_in))
        w = jax.random.uniform(kw, (fan_in, fan_out), jnp.float32, -bound, bound)
        b = jax.random.uniform(kb, (1, fan_out), jnp.float32, -bound, bound)
        return w, b

    w1, b1 = linear(ks[0], ks[1], IN_DIM, HID)
    w2, b2 = linear(ks[2], ks[3], HID, HID)
    w3, b3 = linear(ks[4], ks[5], HID, OUT_DIM)
    return (w1, b1, w2, b2, w3, b3)


def reference_forward(x_nchw, params):
    """Pure-JAX reference mirroring the kernel's bf16-input / f32-accumulate precision."""
    w1, b1, w2, b2, w3, b3 = params
    x = x_nchw.reshape(x_nchw.shape[0], -1).astype(jnp.bfloat16)
    h1 = jnp.maximum(
        jnp.dot(x, w1.astype(jnp.bfloat16), preferred_element_type=jnp.float32) + b1, 0.0
    ).astype(jnp.bfloat16)
    h2 = jnp.maximum(
        jnp.dot(h1, w2.astype(jnp.bfloat16), preferred_element_type=jnp.float32) + b2, 0.0
    ).astype(jnp.bfloat16)
    return jnp.dot(h2, w3.astype(jnp.bfloat16), preferred_element_type=jnp.float32) + b3


if __name__ == "__main__":
    key = jax.random.PRNGKey(0)
    kx, kp = jax.random.split(key)

    B = 32  # small demo batch; not a multiple of 256 -> exercises padding + 2-step grid
    x = jax.random.normal(kx, (B, 1, 28, 28), jnp.float32)  # NCHW, MNIST-sized
    params = init_params(kp)

    logits = neural_network_forward(x, params, tile_b=256)
    logits = jax.block_until_ready(logits)

    ref = reference_forward(x, params)
    assert logits.shape == (B, OUT_DIM)
    assert jnp.allclose(logits, ref, atol=1e-2, rtol=1e-2), "Pallas output mismatch vs reference"

    print("KERNEL_OK")
</pallas_src>

<mosaic_0001>
module attributes {stable_mosaic.version = 11 : i64} {
  func.func @mlp_kernel(%arg0: i32, %arg1: memref<16x896xbf16, #tpu.memory_space<vmem>>, %arg2: memref<896x512xbf16, #tpu.memory_space<vmem>>, %arg3: memref<1x512xf32, #tpu.memory_space<vmem>>, %arg4: memref<512x512xbf16, #tpu.memory_space<vmem>>, %arg5: memref<1x512xf32, #tpu.memory_space<vmem>>, %arg6: memref<512x128xbf16, #tpu.memory_space<vmem>>, %arg7: memref<1x128xf32, #tpu.memory_space<vmem>>, %arg8: memref<16x128xf32, #tpu.memory_space<vmem>>) attributes {dimension_semantics = [#tpu.dimension_semantics<parallel>], iteration_bounds = array<i64: 2>, scalar_prefetch = 0 : i64, scratch_operands = 0 : i64, tpu.core_type = #tpu.core_type<tc>, window_params = [{transform_indices = @transform_0, window_bounds = array<i64: 16, 896>}, {pipeline_mode = #tpu.pipeline_mode<synchronous>, transform_indices = @transform_1, window_bounds = array<i64: 896, 512>}, {pipeline_mode = #tpu.pipeline_mode<synchronous>, transform_indices = @transform_2, window_bounds = array<i64: 1, 512>}, {pipeline_mode = #tpu.pipeline_mode<synchronous>, transform_indices = @transform_3, window_bounds = array<i64: 512, 512>}, {pipeline_mode = #tpu.pipeline_mode<synchronous>, transform_indices = @transform_4, window_bounds = array<i64: 1, 512>}, {pipeline_mode = #tpu.pipeline_mode<synchronous>, transform_indices = @transform_5, window_bounds = array<i64: 512, 128>}, {pipeline_mode = #tpu.pipeline_mode<synchronous>, transform_indices = @transform_6, window_bounds = array<i64: 1, 128>}, {transform_indices = @transform_7, window_bounds = array<i64: 16, 128>}]} {
    %c0 = arith.constant 0 : index
    %c0_0 = arith.constant 0 : index
    %0 = vector.load %arg1[%c0, %c0_0] : memref<16x896xbf16, #tpu.memory_space<vmem>>, vector<16x896xbf16>
    %c0_1 = arith.constant 0 : index
    %c0_2 = arith.constant 0 : index
    %1 = vector.load %arg2[%c0_1, %c0_2] : memref<896x512xbf16, #tpu.memory_space<vmem>>, vector<896x512xbf16>
    %cst = arith.constant dense<0.000000e+00> : vector<16x512xf32>
    %2 = tpu.matmul %0, %1, %cst {dimension_numbers = #tpu.dot_dimension_numbers<[1], [0], [0], [1], [0, 0, 1, 1], [], []>} : vector<16x896xbf16>, vector<896x512xbf16>, vector<16x512xf32> -> vector<16x512xf32>
    %c0_3 = arith.constant 0 : index
    %c0_4 = arith.constant 0 : index
    %3 = vector.load %arg3[%c0_3, %c0_4] : memref<1x512xf32, #tpu.memory_space<vmem>>, vector<1x512xf32>
    %4 = vector.broadcast %3 : vector<1x512xf32> to vector<16x512xf32>
    %5 = arith.addf %2, %4 : vector<16x512xf32>
    %cst_5 = arith.constant 0.000000e+00 : f32
    %6 = vector.broadcast %cst_5 : f32 to vector<16x512xf32>
    %7 = arith.maximumf %5, %6 : vector<16x512xf32>
    %8 = arith.truncf %7 : vector<16x512xf32> to vector<16x512xbf16>
    %c0_6 = arith.constant 0 : index
    %c0_7 = arith.constant 0 : index
    %9 = vector.load %arg4[%c0_6, %c0_7] : memref<512x512xbf16, #tpu.memory_space<vmem>>, vector<512x512xbf16>
    %cst_8 = arith.constant dense<0.000000e+00> : vector<16x512xf32>
    %10 = tpu.matmul %8, %9, %cst_8 {dimension_numbers = #tpu.dot_dimension_numbers<[1], [0], [0], [1], [0, 0, 1, 1], [], []>} : vector<16x512xbf16>, vector<512x512xbf16>, vector<16x512xf32> -> vector<16x512xf32>
    %c0_9 = arith.constant 0 : index
    %c0_10 = arith.constant 0 : index
    %11 = vector.load %arg5[%c0_9, %c0_10] : memref<1x512xf32, #tpu.memory_space<vmem>>, vector<1x512xf32>
    %12 = vector.broadcast %11 : vector<1x512xf32> to vector<16x512xf32>
    %13 = arith.addf %10, %12 : vector<16x512xf32>
    %cst_11 = arith.constant 0.000000e+00 : f32
    %14 = vector.broadcast %cst_11 : f32 to vector<16x512xf32>
    %15 = arith.maximumf %13, %14 : vector<16x512xf32>
    %16 = arith.truncf %15 : vector<16x512xf32> to vector<16x512xbf16>
    %c0_12 = arith.constant 0 : index
    %c0_13 = arith.constant 0 : index
    %17 = vector.load %arg6[%c0_12, %c0_13] : memref<512x128xbf16, #tpu.memory_space<vmem>>, vector<512x128xbf16>
    %cst_14 = arith.constant dense<0.000000e+00> : vector<16x128xf32>
    %18 = tpu.matmul %16, %17, %cst_14 {dimension_numbers = #tpu.dot_dimension_numbers<[1], [0], [0], [1], [0, 0, 1, 1], [], []>} : vector<16x512xbf16>, vector<512x128xbf16>, vector<16x128xf32> -> vector<16x128xf32>
    %c0_15 = arith.constant 0 : index
    %c0_16 = arith.constant 0 : index
    %19 = vector.load %arg7[%c0_15, %c0_16] : memref<1x128xf32, #tpu.memory_space<vmem>>, vector<1x128xf32>
    %20 = vector.broadcast %19 : vector<1x128xf32> to vector<16x128xf32>
    %21 = arith.addf %18, %20 : vector<16x128xf32>
    %c0_17 = arith.constant 0 : index
    %c0_18 = arith.constant 0 : index
    %22 = vector.load %arg8[%c0_17, %c0_18] : memref<16x128xf32, #tpu.memory_space<vmem>>, vector<16x128xf32>
    tpu.vector_store %arg8[%c0_17, %c0_18], %21 {strides = array<i32>} : memref<16x128xf32, #tpu.memory_space<vmem>>, vector<16x128xf32>,
    return
  }
  func.func @transform_0(%arg0: i32) -> (i32, i32) {
    %c0_i32 = arith.constant 0 : i32
    %c0_i32_0 = arith.constant 0 : i32
    return %arg0, %c0_i32 : i32, i32
  }
  func.func @transform_1(%arg0: i32) -> (i32, i32) {
    %c0_i32 = arith.constant 0 : i32
    %c0_i32_0 = arith.constant 0 : i32
    %c0_i32_1 = arith.constant 0 : i32
    return %c0_i32, %c0_i32_0 : i32, i32
  }
  func.func @transform_2(%arg0: i32) -> (i32, i32) {
    %c0_i32 = arith.constant 0 : i32
    %c0_i32_0 = arith.constant 0 : i32
    %c0_i32_1 = arith.constant 0 : i32
    return %c0_i32, %c0_i32_0 : i32, i32
  }
  func.func @transform_3(%arg0: i32) -> (i32, i32) {
    %c0_i32 = arith.constant 0 : i32
    %c0_i32_0 = arith.constant 0 : i32
    %c0_i32_1 = arith.constant 0 : i32
    return %c0_i32, %c0_i32_0 : i32, i32
  }
  func.func @transform_4(%arg0: i32) -> (i32, i32) {
    %c0_i32 = arith.constant 0 : i32
    %c0_i32_0 = arith.constant 0 : i32
    %c0_i32_1 = arith.constant 0 : i32
    return %c0_i32, %c0_i32_0 : i32, i32
  }
  func.func @transform_5(%arg0: i32) -> (i32, i32) {
    %c0_i32 = arith.constant 0 : i32
    %c0_i32_0 = arith.constant 0 : i32
    %c0_i32_1 = arith.constant 0 : i32
    return %c0_i32, %c0_i32_0 : i32, i32
  }
  func.func @transform_6(%arg0: i32) -> (i32, i32) {
    %c0_i32 = arith.constant 0 : i32
    %c0_i32_0 = arith.constant 0 : i32
    %c0_i32_1 = arith.constant 0 : i32
    return %c0_i32, %c0_i32_0 : i32, i32
  }
  func.func @transform_7(%arg0: i32) -> (i32, i32) {
    %c0_i32 = arith.constant 0 : i32
    %c0_i32_0 = arith.constant 0 : i32
    return %arg0, %c0_i32 : i32, i32
  }
}

</mosaic_0001>

<bundles_post_ra>
// kernel: neural_network_forward.1
= control target key start
LH: loop header
LB: loop body
LE: loop exit
PB: predicated region body
PF: predicated region fallthrough
CT: control target
= control target key end

     0   :  { %s4553_s24 = smov 0   ;;  %s5772_s0 = inlined_call_operand.vmem [shape: bf16[32,896], index: 0, kind: input, shape index: {}]   ;;  %s5773_s1 = inlined_call_operand.vmem [shape: bf16[896,512], index: 1, kind: input, shape index: {}]   ;;  %s5774_s2 = inlined_call_operand.vmem [shape: f32[1,512], index: 2, kind: input, shape index: {}]   ;;  %s5775_s3 = inlined_call_operand.vmem [shape: bf16[512,512], index: 3, kind: input, shape index: {}]   ;;  %s5776_s4 = inlined_call_operand.vmem [shape: f32[1,512], index: 4, kind: input, shape index: {}]   ;;  %s5777_s5 = inlined_call_operand.vmem [shape: bf16[512,128], index: 5, kind: input, shape index: {}]   ;;  %s5778_s6 = inlined_call_operand.vmem [shape: f32[1,128], index: 6, kind: input, shape index: {}]   ;;  %s5779_s7 = inlined_call_operand.vmem [shape: f32[32,128], index: 7, kind: output, shape index: {}]  }
   0x1 LB: > { %s3429_s25 = sadd.s32 4294967295, %s4510_s24   ;;  %p3433_p0 = scmp.ge.s32.totalorder %s4510_s24, 1  ;;  %s4510_s24 = sphi %s4553_s24, %s17_s24  }
   0x2   : > { %p239_p1 = scmp.lt.s32.totalorder %s4510_s24, 3 }
   0x4   : > { %p240_p2 = pnand %p3433_p0, %p239_p1 }
   0x5   : > { %v3934_v0 = vld [vmem:[%s5773_s1 + $0x4] ss:$16 sps:$4 sm:$0xff] (!%p240_p2)   ;;  %v3936_v1 = vld [vmem:[%s5773_s1 + $0xc] ss:$16 sps:$4 sm:$0xff] (!%p240_p2)   ;;  %v3938_v2 = vld [vmem:[%s5773_s1] ss:$16 sps:$4 sm:$0xff] (!%p240_p2)  }
   0x6   : > { %243 = sbr.rel (%p240_p2) target bundleno = 960 (0x3c0), region = 48  ;;  %1696 = vmatprep.subr.bf16.mxu0 (!%p240_p2), %v3934_v0  ;;  %v3939_v3 = vld [vmem:[%s5773_s1 + $0x8] ss:$16 sps:$4 sm:$0xff] (!%p240_p2)   ;;  %1868 = vmatprep.subr.bf16.mxu1 (!%p240_p2), %v3936_v1  ;;  %v3940_v4 = vld [vmem:[%s5773_s1 + $0x24] ss:$16 sps:$4 sm:$0xff] (!%p240_p2)   ;;  %s3434_s21 = sshll.u32 (!%p240_p2), %s3429_s25, 1 }
   0x7   : > { %1697 = vmatpush1.bf16.msra.mxu0 (!%p240_p2), %v3938_v2  ;;  %1869 = vmatpush1.bf16.msra.mxu1 (!%p240_p2), %v3939_v3  ;;  %v3942_v5 = vld [vmem:[%s5773_s1 + $0x2c] ss:$16 sps:$4 sm:$0xff] (!%p240_p2)   ;;  %v3944_v6 = vld [vmem:[%s5773_s1 + $0x20] ss:$16 sps:$4 sm:$0xff] (!%p240_p2)   ;;  %v3945_v7 = vld [vmem:[%s5773_s1 + $0x28] ss:$16 sps:$4 sm:$0xff] (!%p240_p2)  }
   0x8   : > { %1698 = vmatprep.subr.bf16.mxu0 (!%p240_p2), %v3940_v4  ;;  %1870 = vmatprep.subr.bf16.mxu1 (!%p240_p2), %v3942_v5  ;;  %v3946_v8 = vld [vmem:[%s5773_s1 + $0x44] ss:$16 sps:$4 sm:$0xff] (!%p240_p2)   ;;  %v3948_v9 = vld [vmem:[%s5773_s1 + $0x4c] ss:$16 sps:$4 sm:$0xff] (!%p240_p2)   ;;  %v3950_v10 = vld [vmem:[%s5773_s1 + $0x40] ss:$16 sps:$4 sm:$0xff] (!%p240_p2)  }
   0x9   : > { %v3951_v11 = vld [vmem:[%s5773_s1 + $0x48] ss:$16 sps:$4 sm:$0xff] (!%p240_p2)   ;;  %v3952_v12 = vld [vmem:[%s5773_s1 + $0x64] ss:$16 sps:$4 sm:$0xff] (!%p240_p2)   ;;  %v3954_v13 = vld [vmem:[%s5773_s1 + $0x6c] ss:$16 sps:$4 sm:$0xff] (!%p240_p2)  }
   0xa   : > { %v3956_v14 = vld [vmem:[%s5773_s1 + $0x60] ss:$16 sps:$4 sm:$0xff] (!%p240_p2)   ;;  %v3957_v15 = vld [vmem:[%s5773_s1 + $0x68] ss:$16 sps:$4 sm:$0xff] (!%p240_p2)   ;;  %v3958_v16 = vld [vmem:[%s5773_s1 + $0x84] ss:$16 sps:$4 sm:$0xff] (!%p240_p2)  }
   0xb   : > { %1699 = vmatpush1.bf16.msra.mxu0 (!%p240_p2), %v3944_v6  ;;  %1871 = vmatpush1.bf16.msra.mxu1 (!%p240_p2), %v3945_v7  ;;  %v3960_v17 = vld [vmem:[%s5773_s1 + $0x8c] ss:$16 sps:$4 sm:$0xff] (!%p240_p2)   ;;  %v3962_v18 = vld [vmem:[%s5773_s1 + $0x80] ss:$16 sps:$4 sm:$0xff] (!%p240_p2)   ;;  %v3963_v19 = vld [vmem:[%s5773_s1 + $0x88] ss:$16 sps:$4 sm:$0xff] (!%p240_p2)  }
   0xc   : > { %1700 = vmatprep.subr.bf16.mxu0 (!%p240_p2), %v3946_v8  ;;  %1872 = vmatprep.subr.bf16.mxu1 (!%p240_p2), %v3948_v9  ;;  %v3964_v20 = vld [vmem:[%s5773_s1 + $0xa4] ss:$16 sps:$4 sm:$0xff] (!%p240_p2)   ;;  %v3966_v21 = vld [vmem:[%s5773_s1 + $0xac] ss:$16 sps:$4 sm:$0xff] (!%p240_p2)   ;;  %v3968_v22 = vld [vmem:[%s5773_s1 + $0xa0] ss:$16 sps:$4 sm:$0xff] (!%p240_p2)  }
   0xd   : > { %v3969_v23 = vld [vmem:[%s5773_s1 + $0xa8] ss:$16 sps:$4 sm:$0xff]   ;;  %v3970_v24 = vld [vmem:[%s5773_s1 + $0xc4] ss:$16 sps:$4 sm:$0xff]   ;;  %v3972_v25 = vld [vmem:[%s5773_s1 + $0xcc] ss:$16 sps:$4 sm:$0xff]  }
   0xe   : > { %v3974_v26 = vld [vmem:[%s5773_s1 + $0xc0] ss:$16 sps:$4 sm:$0xff]   ;;  %v3975_v27 = vld [vmem:[%s5773_s1 + $0xc8] ss:$16 sps:$4 sm:$0xff]   ;;  %v3976_v28 = vld [vmem:[%s5773_s1 + $0xe4] ss:$16 sps:$4 sm:$0xff]  }
   0xf   : > { %1701 = vmatpush1.bf16.msra.mxu0 %v3950_v10  ;;  %1873 = vmatpush1.bf16.msra.mxu1 %v3951_v11  ;;  %v3978_v29 = vld [vmem:[%s5773_s1 + $0xec] ss:$16 sps:$4 sm:$0xff]   ;;  %v3980_v30 = vld [vmem:[%s5773_s1 + $0xe0] ss:$16 sps:$4 sm:$0xff]   ;;  %v3981_v31 = vld [vmem:[%s5773_s1 + $0xe8] ss:$16 sps:$4 sm:$0xff]  }
  0x10   : > { %1702 = vmatprep.subr.bf16.mxu0 %v3952_v12  ;;  %1874 = vmatprep.subr.bf16.mxu1 %v3954_v13  ;;  %v3982_v32 = vld [vmem:[%s5773_s1 + $0x104] ss:$16 sps:$4 sm:$0xff]   ;;  %p273_p3 = scmp.lt.s32.totalorder %s3434_s21, 3  ;;  %v3984_v33 = vld [vmem:[%s5773_s1 + $0x10c] ss:$16 sps:$4 sm:$0xff]  }
  0x11   : > { %v3986_v34 = vld [vmem:[%s5773_s1 + $0x100] ss:$16 sps:$4 sm:$0xff]   ;;  %v3987_v35 = vld [vmem:[%s5773_s1 + $0x108] ss:$16 sps:$4 sm:$0xff]   ;;  %v3988_v36 = vld [vmem:[%s5773_s1 + $0x124] ss:$16 sps:$4 sm:$0xff]  }
  0x12   : > { %s5781_s21 = smov (!%p273_p3, %s3434_s21), 3  ;;  %v3990_v37 = vld [vmem:[%s5773_s1 + $0x12c] ss:$16 sps:$4 sm:$0xff]   ;;  %v3992_v38 = vld [vmem:[%s5773_s1 + $0x120] ss:$16 sps:$4 sm:$0xff]  }
  0x13   : > { %1703 = vmatpush1.bf16.msra.mxu0 %v3956_v14  ;;  %1875 = vmatpush1.bf16.msra.mxu1 %v3957_v15  ;;  %v3993_v39 = vld [vmem:[%s5773_s1 + $0x128] ss:$16 sps:$4 sm:$0xff]   ;;  %v3994_v40 = vld [vmem:[%s5773_s1 + $0x144] ss:$16 sps:$4 sm:$0xff]   ;;  %s3924_s23 = smul.u32 28, %s5781_s21 }
  0x14   : > { %1704 = vmatprep.subr.bf16.mxu0 %v3958_v16  ;;  %1876 = vmatprep.subr.bf16.mxu1 %v3960_v17  ;;  %v3996_v41 = vld [vmem:[%s5773_s1 + $0x14c] ss:$16 sps:$4 sm:$0xff]   ;;  %v3998_v42 = vld [vmem:[%s5773_s1 + $0x140] ss:$16 sps:$4 sm:$0xff]   ;;  %v3999_v43 = vld [vmem:[%s5773_s1 + $0x148] ss:$16 sps:$4 sm:$0xff]  }
  0x15   : > { %v4000_v44 = vld [vmem:[%s5773_s1 + $0x164] ss:$16 sps:$4 sm:$0xff]   ;;  %s4704_s12 = scalar_lea.vmem %s5772_s0, %s3924_s23  ;;  %v4002_v45 = vld [vmem:[%s5773_s1 + $0x16c] ss:$16 sps:$4 sm:$0xff]   ;;  %v4004_v46 = vld [vmem:[%s5773_s1 + $0x160] ss:$16 sps:$4 sm:$0xff]  }
  0x16   : > { %v4005_v47 = vld [vmem:[%s5773_s1 + $0x168] ss:$16 sps:$4 sm:$0xff]   ;;  %v4032_v48 = vld [vmem:[%s4704_s12 + $0x4] ss:$28 sps:$4 sm:$0xff]   ;;  %v4008_v50 = vld [vmem:[%s5773_s1 + $0x18c] ss:$16 sps:$4 sm:$0xff]  }
  0x17   : > { %1705 = vmatpush1.bf16.msra.mxu0 %v3962_v18  ;;  %1877 = vmatpush1.bf16.msra.mxu1 %v3963_v19  ;;  %v4006_v49 = vld [vmem:[%s5773_s1 + $0x184] ss:$16 sps:$4 sm:$0xff]   ;;  %v4010_v51 = vld [vmem:[%s5773_s1 + $0x180] ss:$16 sps:$4 sm:$0xff]   ;;  %v4011_v52 = vld [vmem:[%s5773_s1 + $0x188] ss:$16 sps:$4 sm:$0xff]  }
  0x18   : > { %1706 = vmatprep.subr.bf16.mxu0 %v3964_v20  ;;  %1878 = vmatprep.subr.bf16.mxu1 %v3966_v21  ;;  %v4012_v53 = vld [vmem:[%s5773_s1 + $0x1a4] ss:$16 sps:$4 sm:$0xff]   ;;  %v4014_v54 = vld [vmem:[%s5773_s1 + $0x1ac] ss:$16 sps:$4 sm:$0xff]   ;;  %v4016_v55 = vld [vmem:[%s5773_s1 + $0x1a0] ss:$16 sps:$4 sm:$0xff]  }
  0x19   : > { %1728 = vmatprep.mubr.bf16.mxu0 %v4032_v48  ;;  %1900 = vmatprep.mubr.bf16.mxu1 %v4032_v48  ;;  %v4017_v56 = vld [vmem:[%s5773_s1 + $0x1a8] ss:$16 sps:$4 sm:$0xff]   ;;  %v4018_v57 = vld [vmem:[%s5773_s1 + $0x1c4] ss:$16 sps:$4 sm:$0xff]   ;;  %v4020_v58 = vld [vmem:[%s5773_s1 + $0x1cc] ss:$16 sps:$4 sm:$0xff]  }
  0x1a   : > { %v4022_v59 = vld [vmem:[%s5773_s1 + $0x1c0] ss:$16 sps:$4 sm:$0xff]   ;;  %v4023_v60 = vld [vmem:[%s5773_s1 + $0x1c8] ss:$16 sps:$4 sm:$0xff]   ;;  %v4024_v61 = vld [vmem:[%s5773_s1 + $0x1e4] ss:$16 sps:$4 sm:$0xff]  }
  0x1b   : > { %1707 = vmatpush1.bf16.msra.mxu0 %v3968_v22  ;;  %1879 = vmatpush1.bf16.msra.mxu1 %v3969_v23  ;;  %v4026_v62 = vld [vmem:[%s5773_s1 + $0x1ec] ss:$16 sps:$4 sm:$0xff]   ;;  %v4028_v63 = vld [vmem:[%s5773_s1 + $0x1e0] ss:$16 sps:$4 sm:$0xff]   ;;  %v4029_v0 = vld [vmem:[%s5773_s1 + $0x1e8] ss:$16 sps:$4 sm:$0xff]  }
  0x1c   : > { %1708 = vmatprep.subr.bf16.mxu0 %v3970_v24  ;;  %1880 = vmatprep.subr.bf16.mxu1 %v3972_v25  ;;  %v4035_v1 = vld [vmem:[%s5773_s1 + $0x204] ss:$16 sps:$4 sm:$0xff]   ;;  %v4038_v2 = vld [vmem:[%s5773_s1 + $0x20c] ss:$16 sps:$4 sm:$0xff]   ;;  %v4033_v4 = vld [vmem:[%s5773_s1 + $0x200] ss:$16 sps:$4 sm:$0xff]  }
  0x1d   : > { %v4030_v3 = vld [vmem:[%s4704_s12] ss:$28 sps:$4 sm:$0xff]   ;;  %v4036_v5 = vld [vmem:[%s5773_s1 + $0x208] ss:$16 sps:$4 sm:$0xff]   ;;  %v4041_v6 = vld [vmem:[%s5773_s1 + $0x224] ss:$16 sps:$4 sm:$0xff]  }
  0x1e   : > { %v4044_v7 = vld [vmem:[%s5773_s1 + $0x22c] ss:$16 sps:$4 sm:$0xff]   ;;  %v4039_v8 = vld [vmem:[%s5773_s1 + $0x220] ss:$16 sps:$4 sm:$0xff]   ;;  %v4042_v9 = vld [vmem:[%s5773_s1 + $0x228] ss:$16 sps:$4 sm:$0xff]  }
  0x1f   : > { %1709 = vmatpush1.bf16.msra.mxu0 %v3974_v26  ;;  %1881 = vmatpush1.bf16.msra.mxu1 %v3975_v27  ;;  %v4047_v10 = vld [vmem:[%s5773_s1 + $0x244] ss:$16 sps:$4 sm:$0xff]   ;;  %v4050_v11 = vld [vmem:[%s5773_s1 + $0x24c] ss:$16 sps:$4 sm:$0xff]   ;;  %v4045_v12 = vld [vmem:[%s5773_s1 + $0x240] ss:$16 sps:$4 sm:$0xff]  }
  0x20   : > { %1710 = vmatprep.subr.bf16.mxu0 %v3976_v28  ;;  %1882 = vmatprep.subr.bf16.mxu1 %v3978_v29  ;;  %v4048_v13 = vld [vmem:[%s5773_s1 + $0x248] ss:$16 sps:$4 sm:$0xff]   ;;  %v4053_v14 = vld [vmem:[%s5773_s1 + $0x264] ss:$16 sps:$4 sm:$0xff]   ;;  %v4056_v15 = vld [vmem:[%s5773_s1 + $0x26c] ss:$16 sps:$4 sm:$0xff]  }
  0x21   : > { %v4051_v16 = vld [vmem:[%s5773_s1 + $0x260] ss:$16 sps:$4 sm:$0xff]   ;;  %v4054_v17 = vld [vmem:[%s5773_s1 + $0x268] ss:$16 sps:$4 sm:$0xff]   ;;  %v4059_v18 = vld [vmem:[%s5773_s1 + $0x284] ss:$16 sps:$4 sm:$0xff]  }
  0x22   : > { %v4062_v19 = vld [vmem:[%s5773_s1 + $0x28c] ss:$16 sps:$4 sm:$0xff]   ;;  %v4057_v20 = vld [vmem:[%s5773_s1 + $0x280] ss:$16 sps:$4 sm:$0xff]   ;;  %v4060_v21 = vld [vmem:[%s5773_s1 + $0x288] ss:$16 sps:$4 sm:$0xff]  }
  0x23   : > { %1711 = vmatpush1.bf16.msra.mxu0 %v3980_v30  ;;  %1883 = vmatpush1.bf16.msra.mxu1 %v3981_v31  ;;  %v4065_v22 = vld [vmem:[%s5773_s1 + $0x2a4] ss:$16 sps:$4 sm:$0xff]   ;;  %v4068_v23 = vld [vmem:[%s5773_s1 + $0x2ac] ss:$16 sps:$4 sm:$0xff]   ;;  %v4063_v24 = vld [vmem:[%s5773_s1 + $0x2a0] ss:$16 sps:$4 sm:$0xff]  }
  0x24   : > { %1712 = vmatprep.subr.bf16.mxu0 %v3982_v32  ;;  %1884 = vmatprep.subr.bf16.mxu1 %v3984_v33  ;;  %v4066_v25 = vld [vmem:[%s5773_s1 + $0x2a8] ss:$16 sps:$4 sm:$0xff]   ;;  %v4071_v26 = vld [vmem:[%s5773_s1 + $0x2c4] ss:$16 sps:$4 sm:$0xff]   ;;  %v4074_v27 = vld [vmem:[%s5773_s1 + $0x2cc] ss:$16 sps:$4 sm:$0xff]  }
  0x25   : > { %v4069_v28 = vld [vmem:[%s5773_s1 + $0x2c0] ss:$16 sps:$4 sm:$0xff]   ;;  %v4072_v29 = vld [vmem:[%s5773_s1 + $0x2c8] ss:$16 sps:$4 sm:$0xff]   ;;  %v4077_v31 = vld [vmem:[%s5773_s1 + $0x2e4] ss:$16 sps:$4 sm:$0xff]  }
  0x26   : > { %v4131_v30 = vld [vmem:[%s4704_s12 + $0xc] ss:$28 sps:$4 sm:$0xff]   ;;  %v4075_v33 = vld [vmem:[%s5773_s1 + $0x2e0] ss:$16 sps:$4 sm:$0xff]   ;;  %s3437_s23 = sshll.u32 %s5781_s21, 3 }
  0x27   : > { %1713 = vmatpush1.bf16.msra.mxu0 %v3986_v34  ;;  %1885 = vmatpush1.bf16.msra.mxu1 %v3987_v35  ;;  %v4080_v32 = vld [vmem:[%s5773_s1 + $0x2ec] ss:$16 sps:$4 sm:$0xff]   ;;  %v4078_v34 = vld [vmem:[%s5773_s1 + $0x2e8] ss:$16 sps:$4 sm:$0xff]   ;;  %v4083_v35 = vld [vmem:[%s5773_s1 + $0x304] ss:$16 sps:$4 sm:$0xff]   ;;  %s283_s27 = scalar_lea.vmem %s5779_s7, %s3437_s23 }
  0x28   : > { %1714 = vmatprep.subr.bf16.mxu0 %v3988_v36  ;;  %1886 = vmatprep.subr.bf16.mxu1 %v3990_v37  ;;  %v4086_v36 = vld [vmem:[%s5773_s1 + $0x30c] ss:$16 sps:$4 sm:$0xff]   ;;  %v4081_v37 = vld [vmem:[%s5773_s1 + $0x300] ss:$16 sps:$4 sm:$0xff]  }
  0x29   : > { %v4104_v48 = vld [vmem:[%s5773_s1 + $0x36c] ss:$16 sps:$4 sm:$0xff]  }
  0x2b   : > { %1715 = vmatpush1.bf16.msra.mxu0 %v3992_v38  ;;  %1887 = vmatpush1.bf16.msra.mxu1 %v3993_v39  ;;  %v4084_v38 = vld [vmem:[%s5773_s1 + $0x308] ss:$16 sps:$4 sm:$0xff]   ;;  %v4089_v39 = vld [vmem:[%s5773_s1 + $0x324] ss:$16 sps:$4 sm:$0xff]  }
  0x2c   : > { %1716 = vmatprep.subr.bf16.mxu0 %v3994_v40  ;;  %1888 = vmatprep.subr.bf16.mxu1 %v3996_v41  ;;  %v4092_v40 = vld [vmem:[%s5773_s1 + $0x32c] ss:$16 sps:$4 sm:$0xff]   ;;  %v4087_v41 = vld [vmem:[%s5773_s1 + $0x320] ss:$16 sps:$4 sm:$0xff]  }
  0x2f   : > { %1717 = vmatpush1.bf16.msra.mxu0 %v3998_v42  ;;  %1889 = vmatpush1.bf16.msra.mxu1 %v3999_v43  ;;  %v4090_v42 = vld [vmem:[%s5773_s1 + $0x328] ss:$16 sps:$4 sm:$0xff]   ;;  %v4095_v43 = vld [vmem:[%s5773_s1 + $0x344] ss:$16 sps:$4 sm:$0xff]  }
  0x30   : > { %1718 = vmatprep.subr.bf16.mxu0 %v4000_v44  ;;  %1890 = vmatprep.subr.bf16.mxu1 %v4002_v45  ;;  %v4098_v44 = vld [vmem:[%s5773_s1 + $0x34c] ss:$16 sps:$4 sm:$0xff]   ;;  %v4093_v45 = vld [vmem:[%s5773_s1 + $0x340] ss:$16 sps:$4 sm:$0xff]  }
  0x33   : > { %1719 = vmatpush1.bf16.msra.mxu0 %v4004_v46  ;;  %1891 = vmatpush1.bf16.msra.mxu1 %v4005_v47  ;;  %v4096_v46 = vld [vmem:[%s5773_s1 + $0x348] ss:$16 sps:$4 sm:$0xff]   ;;  %v4101_v47 = vld [vmem:[%s5773_s1 + $0x364] ss:$16 sps:$4 sm:$0xff]  }
  0x34   : > { %1720 = vmatprep.subr.bf16.mxu0 %v4006_v49  ;;  %1892 = vmatprep.subr.bf16.mxu1 %v4008_v50  ;;  %v4099_v49 = vld [vmem:[%s5773_s1 + $0x360] ss:$16 sps:$4 sm:$0xff]   ;;  %v4102_v50 = vld [vmem:[%s5773_s1 + $0x368] ss:$16 sps:$4 sm:$0xff]  }
  0x37   : > { %1721 = vmatpush1.bf16.msra.mxu0 %v4010_v51  ;;  %1893 = vmatpush1.bf16.msra.mxu1 %v4011_v52  ;;  %v4107_v51 = vld [vmem:[%s5773_s1 + $0x384] ss:$16 sps:$4 sm:$0xff]   ;;  %v4110_v52 = vld [vmem:[%s5773_s1 + $0x38c] ss:$16 sps:$4 sm:$0xff]  }
  0x38   : > { %1722 = vmatprep.subr.bf16.mxu0 %v4012_v53  ;;  %1894 = vmatprep.subr.bf16.mxu1 %v4014_v54  ;;  %v4105_v53 = vld [vmem:[%s5773_s1 + $0x380] ss:$16 sps:$4 sm:$0xff]   ;;  %v4108_v54 = vld [vmem:[%s5773_s1 + $0x388] ss:$16 sps:$4 sm:$0xff]  }
  0x3b   : > { %1723 = vmatpush1.bf16.msra.mxu0 %v4016_v55  ;;  %1895 = vmatpush1.bf16.msra.mxu1 %v4017_v56  ;;  %v4113_v55 = vld [vmem:[%s5773_s1 + $0x3a4] ss:$16 sps:$4 sm:$0xff]   ;;  %v4116_v56 = vld [vmem:[%s5773_s1 + $0x3ac] ss:$16 sps:$4 sm:$0xff]  }
  0x3c   : > { %1724 = vmatprep.subr.bf16.mxu0 %v4018_v57  ;;  %1896 = vmatprep.subr.bf16.mxu1 %v4020_v58  ;;  %v4111_v57 = vld [vmem:[%s5773_s1 + $0x3a0] ss:$16 sps:$4 sm:$0xff]   ;;  %v4114_v58 = vld [vmem:[%s5773_s1 + $0x3a8] ss:$16 sps:$4 sm:$0xff]  }
  0x3f   : > { %1725 = vmatpush1.bf16.msra.mxu0 %v4022_v59  ;;  %1897 = vmatpush1.bf16.msra.mxu1 %v4023_v60  ;;  %v4119_v59 = vld [vmem:[%s5773_s1 + $0x3c4] ss:$16 sps:$4 sm:$0xff]   ;;  %v4122_v60 = vld [vmem:[%s5773_s1 + $0x3cc] ss:$16 sps:$4 sm:$0xff]  }
  0x40   : > { %1726 = vmatprep.subr.bf16.mxu0 %v4024_v61  ;;  %1898 = vmatprep.subr.bf16.mxu1 %v4026_v62  ;;  %v4117_v61 = vld [vmem:[%s5773_s1 + $0x3c0] ss:$16 sps:$4 sm:$0xff]   ;;  %v4120_v62 = vld [vmem:[%s5773_s1 + $0x3c8] ss:$16 sps:$4 sm:$0xff]  }
  0x43   : > { %1727 = vmatpush1.bf16.msra.mxu0 %v4028_v63  ;;  %1899 = vmatpush1.bf16.msra.mxu1 %v4029_v0  ;;  %v4125_v63 = vld [vmem:[%s5773_s1 + $0x3e4] ss:$16 sps:$4 sm:$0xff]   ;;  %v4128_v0 = vld [vmem:[%s5773_s1 + $0x3ec] ss:$16 sps:$4 sm:$0xff]  }
  0x44   : > { %1739 = vmatprep.subr.bf16.mxu0 %v4035_v1  ;;  %1911 = vmatprep.subr.bf16.mxu1 %v4038_v2  ;;  %v4123_v1 = vld [vmem:[%s5773_s1 + $0x3e0] ss:$16 sps:$4 sm:$0xff]   ;;  %v4126_v2 = vld [vmem:[%s5773_s1 + $0x3e8] ss:$16 sps:$4 sm:$0xff]  }
  0x46   : > { %1729 = vmatmul.mubr.bf16.vlgmr.msra.gmra.mrb[0].mxu0 %v4030_v3  ;;  %1901 = vmatmul.mubr.bf16.vlgmr.msra.gmra.mrb[0].mxu1 %v4030_v3  ;;  %v4134_v3 = vld [vmem:[%s5773_s1 + $0x404] ss:$16 sps:$4 sm:$0xff]  }
  0x47   : > { %1740 = vmatpush1.bf16.msra.mxu0 %v4033_v4  ;;  %1912 = vmatpush1.bf16.msra.mxu1 %v4036_v5  ;;  %v4137_v4 = vld [vmem:[%s5773_s1 + $0x40c] ss:$16 sps:$4 sm:$0xff]   ;;  %v4129_v5 = vld [vmem:[%s4704_s12 + $0x8] ss:$28 sps:$4 sm:$0xff]  }
  0x48   : > { %1741 = vmatprep.subr.bf16.mxu0 %v4041_v6  ;;  %1913 = vmatprep.subr.bf16.mxu1 %v4044_v7  ;;  %v4132_v6 = vld [vmem:[%s5773_s1 + $0x400] ss:$16 sps:$4 sm:$0xff]   ;;  %v4135_v7 = vld [vmem:[%s5773_s1 + $0x408] ss:$16 sps:$4 sm:$0xff]  }
  0x49   : > { %1771 = vmatprep.mubr.bf16.mxu0 %v4131_v30  ;;  %1943 = vmatprep.mubr.bf16.mxu1 %v4131_v30  ;;  %v4173_v30 = vld [vmem:[%s5773_s1 + $0x4cc] ss:$16 sps:$4 sm:$0xff]  }
  0x4b   : > { %1742 = vmatpush1.bf16.msra.mxu0 %v4039_v8  ;;  %1914 = vmatpush1.bf16.msra.mxu1 %v4042_v9  ;;  %v4140_v8 = vld [vmem:[%s5773_s1 + $0x424] ss:$16 sps:$4 sm:$0xff]   ;;  %v4143_v9 = vld [vmem:[%s5773_s1 + $0x42c] ss:$16 sps:$4 sm:$0xff]  }
  0x4c   : > { %1743 = vmatprep.subr.bf16.mxu0 %v4047_v10  ;;  %1915 = vmatprep.subr.bf16.mxu1 %v4050_v11  ;;  %v4138_v10 = vld [vmem:[%s5773_s1 + $0x420] ss:$16 sps:$4 sm:$0xff]   ;;  %v4141_v11 = vld [vmem:[%s5773_s1 + $0x428] ss:$16 sps:$4 sm:$0xff]  }
  0x4f   : > { %1744 = vmatpush1.bf16.msra.mxu0 %v4045_v12  ;;  %1916 = vmatpush1.bf16.msra.mxu1 %v4048_v13  ;;  %v4230_v12 = vld [vmem:[%s4704_s12 + $0x14] ss:$28 sps:$4 sm:$0xff]  }
  0x50   : > { %1745 = vmatprep.subr.bf16.mxu0 %v4053_v14  ;;  %1917 = vmatprep.subr.bf16.mxu1 %v4056_v15  ;;  %v4146_v13 = vld [vmem:[%s5773_s1 + $0x444] ss:$16 sps:$4 sm:$0xff]   ;;  %v4149_v14 = vld [vmem:[%s5773_s1 + $0x44c] ss:$16 sps:$4 sm:$0xff]   ;;  %v4144_v15 = vld [vmem:[%s5773_s1 + $0x440] ss:$16 sps:$4 sm:$0xff]  }
  0x53   : > { %1746 = vmatpush1.bf16.msra.mxu0 %v4051_v16  ;;  %1918 = vmatpush1.bf16.msra.mxu1 %v4054_v17  ;;  %v4147_v16 = vld [vmem:[%s5773_s1 + $0x448] ss:$16 sps:$4 sm:$0xff]   ;;  %v4152_v17 = vld [vmem:[%s5773_s1 + $0x464] ss:$16 sps:$4 sm:$0xff]  }
  0x54   : > { %1747 = vmatprep.subr.bf16.mxu0 %v4059_v18  ;;  %1919 = vmatprep.subr.bf16.mxu1 %v4062_v19  ;;  %v4155_v18 = vld [vmem:[%s5773_s1 + $0x46c] ss:$16 sps:$4 sm:$0xff]   ;;  %v4150_v19 = vld [vmem:[%s5773_s1 + $0x460] ss:$16 sps:$4 sm:$0xff]  }
  0x57   : > { %1748 = vmatpush1.bf16.msra.mxu0 %v4057_v20  ;;  %1920 = vmatpush1.bf16.msra.mxu1 %v4060_v21  ;;  %v4153_v20 = vld [vmem:[%s5773_s1 + $0x468] ss:$16 sps:$4 sm:$0xff]   ;;  %v4158_v21 = vld [vmem:[%s5773_s1 + $0x484] ss:$16 sps:$4 sm:$0xff]  }
  0x58   : > { %1749 = vmatprep.subr.bf16.mxu0 %v4065_v22  ;;  %1921 = vmatprep.subr.bf16.mxu1 %v4068_v23  ;;  %v4161_v22 = vld [vmem:[%s5773_s1 + $0x48c] ss:$16 sps:$4 sm:$0xff]   ;;  %v4156_v23 = vld [vmem:[%s5773_s1 + $0x480] ss:$16 sps:$4 sm:$0xff]  }
  0x5b   : > { %1750 = vmatpush1.bf16.msra.mxu0 %v4063_v24  ;;  %1922 = vmatpush1.bf16.msra.mxu1 %v4066_v25  ;;  %v4159_v24 = vld [vmem:[%s5773_s1 + $0x488] ss:$16 sps:$4 sm:$0xff]   ;;  %v4164_v25 = vld [vmem:[%s5773_s1 + $0x4a4] ss:$16 sps:$4 sm:$0xff]  }
  0x5c   : > { %1751 = vmatprep.subr.bf16.mxu0 %v4071_v26  ;;  %1923 = vmatprep.subr.bf16.mxu1 %v4074_v27  ;;  %v4167_v26 = vld [vmem:[%s5773_s1 + $0x4ac] ss:$16 sps:$4 sm:$0xff]   ;;  %v4162_v27 = vld [vmem:[%s5773_s1 + $0x4a0] ss:$16 sps:$4 sm:$0xff]  }
  0x5f   : > { %1752 = vmatpush1.bf16.msra.mxu0 %v4069_v28  ;;  %1924 = vmatpush1.bf16.msra.mxu1 %v4072_v29  ;;  %v4165_v28 = vld [vmem:[%s5773_s1 + $0x4a8] ss:$16 sps:$4 sm:$0xff]   ;;  %v4170_v29 = vld [vmem:[%s5773_s1 + $0x4c4] ss:$16 sps:$4 sm:$0xff]  }
  0x60   : > { %1753 = vmatprep.subr.bf16.mxu0 %v4077_v31  ;;  %1925 = vmatprep.subr.bf16.mxu1 %v4080_v32  ;;  %v4168_v31 = vld [vmem:[%s5773_s1 + $0x4c0] ss:$16 sps:$4 sm:$0xff]   ;;  %v4171_v32 = vld [vmem:[%s5773_s1 + $0x4c8] ss:$16 sps:$4 sm:$0xff]  }
  0x63   : > { %1754 = vmatpush1.bf16.msra.mxu0 %v4075_v33  ;;  %1926 = vmatpush1.bf16.msra.mxu1 %v4078_v34  ;;  %v4176_v33 = vld [vmem:[%s5773_s1 + $0x4e4] ss:$16 sps:$4 sm:$0xff]   ;;  %v4179_v34 = vld [vmem:[%s5773_s1 + $0x4ec] ss:$16 sps:$4 sm:$0xff]  }
  0x64   : > { %1755 = vmatprep.subr.bf16.mxu0 %v4083_v35  ;;  %1927 = vmatprep.subr.bf16.mxu1 %v4086_v36  ;;  %v4174_v35 = vld [vmem:[%s5773_s1 + $0x4e0] ss:$16 sps:$4 sm:$0xff]   ;;  %v4177_v36 = vld [vmem:[%s5773_s1 + $0x4e8] ss:$16 sps:$4 sm:$0xff]  }
  0x67   : > { %1756 = vmatpush1.bf16.msra.mxu0 %v4081_v37  ;;  %1928 = vmatpush1.bf16.msra.mxu1 %v4084_v38  ;;  %v4182_v37 = vld [vmem:[%s5773_s1 + $0x504] ss:$16 sps:$4 sm:$0xff]   ;;  %v4185_v38 = vld [vmem:[%s5773_s1 + $0x50c] ss:$16 sps:$4 sm:$0xff]  }
  0x68   : > { %1757 = vmatprep.subr.bf16.mxu0 %v4089_v39  ;;  %1929 = vmatprep.subr.bf16.mxu1 %v4092_v40  ;;  %v4180_v39 = vld [vmem:[%s5773_s1 + $0x500] ss:$16 sps:$4 sm:$0xff]   ;;  %v4183_v40 = vld [vmem:[%s5773_s1 + $0x508] ss:$16 sps:$4 sm:$0xff]  }
  0x6b   : > { %1758 = vmatpush1.bf16.msra.mxu0 %v4087_v41  ;;  %1930 = vmatpush1.bf16.msra.mxu1 %v4090_v42  ;;  %v4188_v41 = vld [vmem:[%s5773_s1 + $0x524] ss:$16 sps:$4 sm:$0xff]   ;;  %v4191_v42 = vld [vmem:[%s5773_s1 + $0x52c] ss:$16 sps:$4 sm:$0xff]  }
  0x6c   : > { %1759 = vmatprep.subr.bf16.mxu0 %v4095_v43  ;;  %1931 = vmatprep.subr.bf16.mxu1 %v4098_v44  ;;  %v4186_v43 = vld [vmem:[%s5773_s1 + $0x520] ss:$16 sps:$4 sm:$0xff]   ;;  %v4189_v44 = vld [vmem:[%s5773_s1 + $0x528] ss:$16 sps:$4 sm:$0xff]  }
  0x6f   : > { %1760 = vmatpush1.bf16.msra.mxu0 %v4093_v45  ;;  %1932 = vmatpush1.bf16.msra.mxu1 %v4096_v46  ;;  %v4194_v45 = vld [vmem:[%s5773_s1 + $0x544] ss:$16 sps:$4 sm:$0xff]   ;;  %v4197_v46 = vld [vmem:[%s5773_s1 + $0x54c] ss:$16 sps:$4 sm:$0xff]  }
  0x70   : > { %1761 = vmatprep.subr.bf16.mxu0 %v4101_v47  ;;  %1933 = vmatprep.subr.bf16.mxu1 %v4104_v48  ;;  %v4192_v47 = vld [vmem:[%s5773_s1 + $0x540] ss:$16 sps:$4 sm:$0xff]   ;;  %v4195_v48 = vld [vmem:[%s5773_s1 + $0x548] ss:$16 sps:$4 sm:$0xff]  }
  0x73   : > { %1762 = vmatpush1.bf16.msra.mxu0 %v4099_v49  ;;  %1934 = vmatpush1.bf16.msra.mxu1 %v4102_v50  ;;  %v4200_v49 = vld [vmem:[%s5773_s1 + $0x564] ss:$16 sps:$4 sm:$0xff]   ;;  %v4203_v50 = vld [vmem:[%s5773_s1 + $0x56c] ss:$16 sps:$4 sm:$0xff]  }
  0x74   : > { %1763 = vmatprep.subr.bf16.mxu0 %v4107_v51  ;;  %1935 = vmatprep.subr.bf16.mxu1 %v4110_v52  ;;  %v4198_v51 = vld [vmem:[%s5773_s1 + $0x560] ss:$16 sps:$4 sm:$0xff]   ;;  %v4201_v52 = vld [vmem:[%s5773_s1 + $0x568] ss:$16 sps:$4 sm:$0xff]  }
  0x77   : > { %1764 = vmatpush1.bf16.msra.mxu0 %v4105_v53  ;;  %1936 = vmatpush1.bf16.msra.mxu1 %v4108_v54  ;;  %v4206_v53 = vld [vmem:[%s5773_s1 + $0x584] ss:$16 sps:$4 sm:$0xff]   ;;  %v4209_v54 = vld [vmem:[%s5773_s1 + $0x58c] ss:$16 sps:$4 sm:$0xff]  }
  0x78   : > { %1765 = vmatprep.subr.bf16.mxu0 %v4113_v55  ;;  %1937 = vmatprep.subr.bf16.mxu1 %v4116_v56  ;;  %v4204_v55 = vld [vmem:[%s5773_s1 + $0x580] ss:$16 sps:$4 sm:$0xff]   ;;  %v4207_v56 = vld [vmem:[%s5773_s1 + $0x588] ss:$16 sps:$4 sm:$0xff]  }
  0x7b   : > { %1766 = vmatpush1.bf16.msra.mxu0 %v4111_v57  ;;  %1938 = vmatpush1.bf16.msra.mxu1 %v4114_v58  ;;  %v4212_v57 = vld [vmem:[%s5773_s1 + $0x5a4] ss:$16 sps:$4 sm:$0xff]   ;;  %v4215_v58 = vld [vmem:[%s5773_s1 + $0x5ac] ss:$16 sps:$4 sm:$0xff]  }
  0x7c   : > { %1767 = vmatprep.subr.bf16.mxu0 %v4119_v59  ;;  %1939 = vmatprep.subr.bf16.mxu1 %v4122_v60  ;;  %v4210_v59 = vld [vmem:[%s5773_s1 + $0x5a0] ss:$16 sps:$4 sm:$0xff]   ;;  %v4213_v60 = vld [vmem:[%s5773_s1 + $0x5a8] ss:$16 sps:$4 sm:$0xff]  }
  0x7f   : > { %1768 = vmatpush1.bf16.msra.mxu0 %v4117_v61  ;;  %1940 = vmatpush1.bf16.msra.mxu1 %v4120_v62  ;;  %v4218_v61 = vld [vmem:[%s5773_s1 + $0x5c4] ss:$16 sps:$4 sm:$0xff]   ;;  %v4221_v62 = vld [vmem:[%s5773_s1 + $0x5cc] ss:$16 sps:$4 sm:$0xff]  }
  0x80   : > { %1769 = vmatprep.subr.bf16.mxu0 %v4125_v63  ;;  %1941 = vmatprep.subr.bf16.mxu1 %v4128_v0  ;;  %v4216_v63 = vld [vmem:[%s5773_s1 + $0x5c0] ss:$16 sps:$4 sm:$0xff]   ;;  %v4219_v0 = vld [vmem:[%s5773_s1 + $0x5c8] ss:$16 sps:$4 sm:$0xff]  }
  0x83   : > { %1770 = vmatpush1.bf16.msra.mxu0 %v4123_v1  ;;  %1942 = vmatpush1.bf16.msra.mxu1 %v4126_v2  ;;  %v4224_v1 = vld [vmem:[%s5773_s1 + $0x5e4] ss:$16 sps:$4 sm:$0xff]   ;;  %v4227_v2 = vld [vmem:[%s5773_s1 + $0x5ec] ss:$16 sps:$4 sm:$0xff]  }
  0x84   : > { %1782 = vmatprep.subr.bf16.mxu0 %v4134_v3  ;;  %1954 = vmatprep.subr.bf16.mxu1 %v4137_v4  ;;  %v4222_v3 = vld [vmem:[%s5773_s1 + $0x5e0] ss:$16 sps:$4 sm:$0xff]   ;;  %v4225_v4 = vld [vmem:[%s5773_s1 + $0x5e8] ss:$16 sps:$4 sm:$0xff]  }
  0x86   : > { %1772 = vmatmul.mubr.bf16.vlgmr.msra.gmra.mrb[0].mxu0 %v4129_v5  ;;  %1944 = vmatmul.mubr.bf16.vlgmr.msra.gmra.mrb[0].mxu1 %v4129_v5  ;;  %v4233_v5 = vld [vmem:[%s5773_s1 + $0x604] ss:$16 sps:$4 sm:$0xff]  }
  0x87   : > { %1783 = vmatpush1.bf16.msra.mxu0 %v4132_v6  ;;  %1955 = vmatpush1.bf16.msra.mxu1 %v4135_v7  ;;  %v4228_v6 = vld [vmem:[%s4704_s12 + $0x10] ss:$28 sps:$4 sm:$0xff]  }
  0x88   : > { %1784 = vmatprep.subr.bf16.mxu0 %v4140_v8  ;;  %1956 = vmatprep.subr.bf16.mxu1 %v4143_v9  ;;  %v4236_v7 = vld [vmem:[%s5773_s1 + $0x60c] ss:$16 sps:$4 sm:$0xff]   ;;  %v4231_v8 = vld [vmem:[%s5773_s1 + $0x600] ss:$16 sps:$4 sm:$0xff]   ;;  %v4234_v9 = vld [vmem:[%s5773_s1 + $0x608] ss:$16 sps:$4 sm:$0xff]  }
  0x89   : > { %1814 = vmatprep.mubr.bf16.mxu0 %v4230_v12  ;;  %1986 = vmatprep.mubr.bf16.mxu1 %v4230_v12  ;;  %v4237_v12 = vld [vmem:[%s5773_s1 + $0x620] ss:$16 sps:$4 sm:$0xff]  }
  0x8b   : > { %1785 = vmatpush1.bf16.msra.mxu0 %v4138_v10  ;;  %1957 = vmatpush1.bf16.msra.mxu1 %v4141_v11  ;;  %v4239_v10 = vld [vmem:[%s5773_s1 + $0x624] ss:$16 sps:$4 sm:$0xff]   ;;  %v4242_v11 = vld [vmem:[%s5773_s1 + $0x62c] ss:$16 sps:$4 sm:$0xff]  }
  0x8c   : > { %1786 = vmatprep.subr.bf16.mxu0 %v4146_v13  ;;  %1958 = vmatprep.subr.bf16.mxu1 %v4149_v14  ;;  %v4240_v13 = vld [vmem:[%s5773_s1 + $0x628] ss:$16 sps:$4 sm:$0xff]   ;;  %v4245_v14 = vld [vmem:[%s5773_s1 + $0x644] ss:$16 sps:$4 sm:$0xff]  }
  0x8f   : > { %1787 = vmatpush1.bf16.msra.mxu0 %v4144_v15  ;;  %1959 = vmatpush1.bf16.msra.mxu1 %v4147_v16  ;;  %v4248_v15 = vld [vmem:[%s5773_s1 + $0x64c] ss:$16 sps:$4 sm:$0xff]   ;;  %v4243_v16 = vld [vmem:[%s5773_s1 + $0x640] ss:$16 sps:$4 sm:$0xff]  }
  0x90   : > { %1788 = vmatprep.subr.bf16.mxu0 %v4152_v17  ;;  %1960 = vmatprep.subr.bf16.mxu1 %v4155_v18  ;;  %v4246_v17 = vld [vmem:[%s5773_s1 + $0x648] ss:$16 sps:$4 sm:$0xff]   ;;  %v4512_v18 = vmov 0  }
  0x93   : > { %1789 = vmatpush1.bf16.msra.mxu0 %v4150_v19  ;;  %1961 = vmatpush1.bf16.msra.mxu1 %v4153_v20  ;;  %v4251_v19 = vld [vmem:[%s5773_s1 + $0x664] ss:$16 sps:$4 sm:$0xff]   ;;  %v4254_v20 = vld [vmem:[%s5773_s1 + $0x66c] ss:$16 sps:$4 sm:$0xff]  }
  0x94   : > { %1790 = vmatprep.subr.bf16.mxu0 %v4158_v21  ;;  %1962 = vmatprep.subr.bf16.mxu1 %v4161_v22  ;;  %v4249_v21 = vld [vmem:[%s5773_s1 + $0x660] ss:$16 sps:$4 sm:$0xff]   ;;  %v4252_v22 = vld [vmem:[%s5773_s1 + $0x668] ss:$16 sps:$4 sm:$0xff]  }
  0x97   : > { %1791 = vmatpush1.bf16.msra.mxu0 %v4156_v23  ;;  %1963 = vmatpush1.bf16.msra.mxu1 %v4159_v24  ;;  %v4257_v23 = vld [vmem:[%s5773_s1 + $0x684] ss:$16 sps:$4 sm:$0xff]   ;;  %v4260_v24 = vld [vmem:[%s5773_s1 + $0x68c] ss:$16 sps:$4 sm:$0xff]  }
  0x98   : > { %1792 = vmatprep.subr.bf16.mxu0 %v4164_v25  ;;  %1964 = vmatprep.subr.bf16.mxu1 %v4167_v26  ;;  %v4255_v25 = vld [vmem:[%s5773_s1 + $0x680] ss:$16 sps:$4 sm:$0xff]   ;;  %v4258_v26 = vld [vmem:[%s5773_s1 + $0x688] ss:$16 sps:$4 sm:$0xff]  }
  0x9b   : > { %1793 = vmatpush1.bf16.msra.mxu0 %v4162_v27  ;;  %1965 = vmatpush1.bf16.msra.mxu1 %v4165_v28  ;;  %v4263_v27 = vld [vmem:[%s5773_s1 + $0x6a4] ss:$16 sps:$4 sm:$0xff]   ;;  %v4266_v28 = vld [vmem:[%s5773_s1 + $0x6ac] ss:$16 sps:$4 sm:$0xff]  }
  0x9c   : > { %1794 = vmatprep.subr.bf16.mxu0 %v4170_v29  ;;  %1966 = vmatprep.subr.bf16.mxu1 %v4173_v30  ;;  %v4261_v29 = vld [vmem:[%s5773_s1 + $0x6a0] ss:$16 sps:$4 sm:$0xff]   ;;  %v4264_v30 = vld [vmem:[%s5773_s1 + $0x6a8] ss:$16 sps:$4 sm:$0xff]  }
  0x9f   : > { %1795 = vmatpush1.bf16.msra.mxu0 %v4168_v31  ;;  %1967 = vmatpush1.bf16.msra.mxu1 %v4171_v32  ;;  %v4269_v31 = vld [vmem:[%s5773_s1 + $0x6c4] ss:$16 sps:$4 sm:$0xff]   ;;  %v4272_v32 = vld [vmem:[%s5773_s1 + $0x6cc] ss:$16 sps:$4 sm:$0xff]  }
  0xa0   : > { %1796 = vmatprep.subr.bf16.mxu0 %v4176_v33  ;;  %1968 = vmatprep.subr.bf16.mxu1 %v4179_v34  ;;  %v4267_v33 = vld [vmem:[%s5773_s1 + $0x6c0] ss:$16 sps:$4 sm:$0xff]   ;;  %v4270_v34 = vld [vmem:[%s5773_s1 + $0x6c8] ss:$16 sps:$4 sm:$0xff]  }
  0xa3   : > { %1797 = vmatpush1.bf16.msra.mxu0 %v4174_v35  ;;  %1969 = vmatpush1.bf16.msra.mxu1 %v4177_v36  ;;  %v4275_v35 = vld [vmem:[%s5773_s1 + $0x6e4] ss:$16 sps:$4 sm:$0xff]   ;;  %v4278_v36 = vld [vmem:[%s5773_s1 + $0x6ec] ss:$16 sps:$4 sm:$0xff]  }
  0xa4   : > { %1798 = vmatprep.subr.bf16.mxu0 %v4182_v37  ;;  %1970 = vmatprep.subr.bf16.mxu1 %v4185_v38  ;;  %v4273_v37 = vld [vmem:[%s5773_s1 + $0x6e0] ss:$16 sps:$4 sm:$0xff]   ;;  %v4276_v38 = vld [vmem:[%s5773_s1 + $0x6e8] ss:$16 sps:$4 sm:$0xff]  }
  0xa7   : > { %1799 = vmatpush1.bf16.msra.mxu0 %v4180_v39  ;;  %1971 = vmatpush1.bf16.msra.mxu1 %v4183_v40  ;;  %v4282_v39 = vld [vmem:[%s5775_s3 + $0x4] ss:$16 sps:$4 sm:$0xff]   ;;  %v4285_v40 = vld [vmem:[%s5775_s3 + $0xc] ss:$16 sps:$4 sm:$0xff]  }
  0xa8   : > { %1800 = vmatprep.subr.bf16.mxu0 %v4188_v41  ;;  %1972 = vmatprep.subr.bf16.mxu1 %v4191_v42  ;;  %v4279_v41 = vld [vmem:[%s4704_s12 + $0x18] ss:$28 sps:$4 sm:$0xff]   ;;  %v4280_v42 = vld [vmem:[%s5775_s3] ss:$16 sps:$4 sm:$0xff]  }
  0xab   : > { %1801 = vmatpush1.bf16.msra.mxu0 %v4186_v43  ;;  %1973 = vmatpush1.bf16.msra.mxu1 %v4189_v44  ;;  %v4283_v43 = vld [vmem:[%s5775_s3 + $0x8] ss:$16 sps:$4 sm:$0xff]   ;;  %v4288_v44 = vld [vmem:[%s5775_s3 + $0x24] ss:$16 sps:$4 sm:$0xff]  }
  0xac   : > { %1802 = vmatprep.subr.bf16.mxu0 %v4194_v45  ;;  %1974 = vmatprep.subr.bf16.mxu1 %v4197_v46  ;;  %v4291_v45 = vld [vmem:[%s5775_s3 + $0x2c] ss:$16 sps:$4 sm:$0xff]   ;;  %v4286_v46 = vld [vmem:[%s5775_s3 + $0x20] ss:$16 sps:$4 sm:$0xff]  }
  0xaf   : > { %1803 = vmatpush1.bf16.msra.mxu0 %v4192_v47  ;;  %1975 = vmatpush1.bf16.msra.mxu1 %v4195_v48  ;;  %v4289_v47 = vld [vmem:[%s5775_s3 + $0x28] ss:$16 sps:$4 sm:$0xff]   ;;  %v4294_v48 = vld [vmem:[%s5775_s3 + $0x44] ss:$16 sps:$4 sm:$0xff]  }
  0xb0   : > { %1804 = vmatprep.subr.bf16.mxu0 %v4200_v49  ;;  %1976 = vmatprep.subr.bf16.mxu1 %v4203_v50  ;;  %v4297_v49 = vld [vmem:[%s5775_s3 + $0x4c] ss:$16 sps:$4 sm:$0xff]   ;;  %v4292_v50 = vld [vmem:[%s5775_s3 + $0x40] ss:$16 sps:$4 sm:$0xff]  }
  0xb3   : > { %1805 = vmatpush1.bf16.msra.mxu0 %v4198_v51  ;;  %1977 = vmatpush1.bf16.msra.mxu1 %v4201_v52  ;;  %v4295_v51 = vld [vmem:[%s5775_s3 + $0x48] ss:$16 sps:$4 sm:$0xff]   ;;  %v4300_v52 = vld [vmem:[%s5775_s3 + $0x64] ss:$16 sps:$4 sm:$0xff]  }
  0xb4   : > { %1806 = vmatprep.subr.bf16.mxu0 %v4206_v53  ;;  %1978 = vmatprep.subr.bf16.mxu1 %v4209_v54  ;;  %v4303_v53 = vld [vmem:[%s5775_s3 + $0x6c] ss:$16 sps:$4 sm:$0xff]   ;;  %v4298_v54 = vld [vmem:[%s5775_s3 + $0x60] ss:$16 sps:$4 sm:$0xff]  }
  0xb7   : > { %1807 = vmatpush1.bf16.msra.mxu0 %v4204_v55  ;;  %1979 = vmatpush1.bf16.msra.mxu1 %v4207_v56  ;;  %v4301_v55 = vld [vmem:[%s5775_s3 + $0x68] ss:$16 sps:$4 sm:$0xff]   ;;  %v4306_v56 = vld [vmem:[%s5775_s3 + $0x84] ss:$16 sps:$4 sm:$0xff]  }
  0xb8   : > { %1808 = vmatprep.subr.bf16.mxu0 %v4212_v57  ;;  %1980 = vmatprep.subr.bf16.mxu1 %v4215_v58  ;;  %v4309_v57 = vld [vmem:[%s5775_s3 + $0x8c] ss:$16 sps:$4 sm:$0xff]   ;;  %v4304_v58 = vld [vmem:[%s5775_s3 + $0x80] ss:$16 sps:$4 sm:$0xff]  }
  0xbb   : > { %1809 = vmatpush1.bf16.msra.mxu0 %v4210_v59  ;;  %1981 = vmatpush1.bf16.msra.mxu1 %v4213_v60  ;;  %v4307_v59 = vld [vmem:[%s5775_s3 + $0x88] ss:$16 sps:$4 sm:$0xff]   ;;  %v4312_v60 = vld [vmem:[%s5775_s3 + $0xa4] ss:$16 sps:$4 sm:$0xff]  }
  0xbc   : > { %1810 = vmatprep.subr.bf16.mxu0 %v4218_v61  ;;  %1982 = vmatprep.subr.bf16.mxu1 %v4221_v62  ;;  %v4315_v61 = vld [vmem:[%s5775_s3 + $0xac] ss:$16 sps:$4 sm:$0xff]   ;;  %v4310_v62 = vld [vmem:[%s5775_s3 + $0xa0] ss:$16 sps:$4 sm:$0xff]  }
  0xbf   : > { %1811 = vmatpush1.bf16.msra.mxu0 %v4216_v63  ;;  %1983 = vmatpush1.bf16.msra.mxu1 %v4219_v0  ;;  %v4313_v63 = vld [vmem:[%s5775_s3 + $0xa8] ss:$16 sps:$4 sm:$0xff]   ;;  %v4318_v0 = vld [vmem:[%s5775_s3 + $0xc4] ss:$16 sps:$4 sm:$0xff]  }
  0xc0   : > { %1812 = vmatprep.subr.bf16.mxu0 %v4224_v1  ;;  %1984 = vmatprep.subr.bf16.mxu1 %v4227_v2  ;;  %v4321_v1 = vld [vmem:[%s5775_s3 + $0xcc] ss:$16 sps:$4 sm:$0xff]   ;;  %v4316_v2 = vld [vmem:[%s5775_s3 + $0xc0] ss:$16 sps:$4 sm:$0xff]  }
  0xc3   : > { %1813 = vmatpush1.bf16.msra.mxu0 %v4222_v3  ;;  %1985 = vmatpush1.bf16.msra.mxu1 %v4225_v4  ;;  %v4319_v3 = vld [vmem:[%s5775_s3 + $0xc8] ss:$16 sps:$4 sm:$0xff]   ;;  %v4324_v4 = vld [vmem:[%s5775_s3 + $0xe4] ss:$16 sps:$4 sm:$0xff]  }
  0xc4   : > { %1825 = vmatprep.subr.bf16.mxu0 %v4233_v5  ;;  %1997 = vmatprep.subr.bf16.mxu1 %v4236_v7  ;;  %v4327_v5 = vld [vmem:[%s5775_s3 + $0xec] ss:$16 sps:$4 sm:$0xff]   ;;  %v4325_v7 = vld [vmem:[%s5775_s3 + $0xe8] ss:$16 sps:$4 sm:$0xff]  }
  0xc6   : > { %1815 = vmatmul.mubr.bf16.vlgmr.msra.gmra.mrb[0].mxu0 %v4228_v6  ;;  %1987 = vmatmul.mubr.bf16.vlgmr.msra.gmra.mrb[0].mxu1 %v4228_v6  ;;  %v4322_v6 = vld [vmem:[%s5775_s3 + $0xe0] ss:$16 sps:$4 sm:$0xff]  }
  0xc7   : > { %1826 = vmatpush1.bf16.msra.mxu0 %v4231_v8  ;;  %1998 = vmatpush1.bf16.msra.mxu1 %v4234_v9  ;;  %v4330_v8 = vld [vmem:[%s5775_s3 + $0x104] ss:$16 sps:$4 sm:$0xff]   ;;  %v4333_v9 = vld [vmem:[%s5775_s3 + $0x10c] ss:$16 sps:$4 sm:$0xff]  }
  0xc8   : > { %1827 = vmatprep.subr.bf16.mxu0 %v4239_v10  ;;  %1999 = vmatprep.subr.bf16.mxu1 %v4242_v11  ;;  %v4328_v10 = vld [vmem:[%s5775_s3 + $0x100] ss:$16 sps:$4 sm:$0xff]   ;;  %v4331_v11 = vld [vmem:[%s5775_s3 + $0x108] ss:$16 sps:$4 sm:$0xff]  }
  0xc9   : > { %1857 = vmatprep.mubr.bf16.mxu0 %v4512_v18  ;;  %2029 = vmatprep.mubr.bf16.mxu1 %v4512_v18  ;;  %v4340_v18 = vld [vmem:[%s5775_s3 + $0x140] ss:$16 sps:$4 sm:$0xff]  }
  0xcb   : > { %1828 = vmatpush1.bf16.msra.mxu0 %v4237_v12  ;;  %2000 = vmatpush1.bf16.msra.mxu1 %v4240_v13  ;;  %v4336_v12 = vld [vmem:[%s5775_s3 + $0x124] ss:$16 sps:$4 sm:$0xff]   ;;  %v4339_v13 = vld [vmem:[%s5775_s3 + $0x12c] ss:$16 sps:$4 sm:$0xff]  }
  0xcc   : > { %1829 = vmatprep.subr.bf16.mxu0 %v4245_v14  ;;  %2001 = vmatprep.subr.bf16.mxu1 %v4248_v15  ;;  %v4334_v14 = vld [vmem:[%s5775_s3 + $0x120] ss:$16 sps:$4 sm:$0xff]   ;;  %v4337_v15 = vld [vmem:[%s5775_s3 + $0x128] ss:$16 sps:$4 sm:$0xff]  }
  0xcf   : > { %1830 = vmatpush1.bf16.msra.mxu0 %v4243_v16  ;;  %2002 = vmatpush1.bf16.msra.mxu1 %v4246_v17  ;;  %v4342_v16 = vld [vmem:[%s5775_s3 + $0x144] ss:$16 sps:$4 sm:$0xff]   ;;  %v4345_v17 = vld [vmem:[%s5775_s3 + $0x14c] ss:$16 sps:$4 sm:$0xff]  }
  0xd0   : > { %1831 = vmatprep.subr.bf16.mxu0 %v4251_v19  ;;  %2003 = vmatprep.subr.bf16.mxu1 %v4254_v20  ;;  %v4343_v19 = vld [vmem:[%s5775_s3 + $0x148] ss:$16 sps:$4 sm:$0xff]   ;;  %v4348_v20 = vld [vmem:[%s5775_s3 + $0x164] ss:$16 sps:$4 sm:$0xff]  }
  0xd3   : > { %1832 = vmatpush1.bf16.msra.mxu0 %v4249_v21  ;;  %2004 = vmatpush1.bf16.msra.mxu1 %v4252_v22  ;;  %v4351_v21 = vld [vmem:[%s5775_s3 + $0x16c] ss:$16 sps:$4 sm:$0xff]   ;;  %v4346_v22 = vld [vmem:[%s5775_s3 + $0x160] ss:$16 sps:$4 sm:$0xff]  }
  0xd4   : > { %1833 = vmatprep.subr.bf16.mxu0 %v4257_v23  ;;  %2005 = vmatprep.subr.bf16.mxu1 %v4260_v24  ;;  %v4349_v23 = vld [vmem:[%s5775_s3 + $0x168] ss:$16 sps:$4 sm:$0xff]   ;;  %v4354_v24 = vld [vmem:[%s5775_s3 + $0x184] ss:$16 sps:$4 sm:$0xff]  }
  0xd7   : > { %1834 = vmatpush1.bf16.msra.mxu0 %v4255_v25  ;;  %2006 = vmatpush1.bf16.msra.mxu1 %v4258_v26  ;;  %v4357_v25 = vld [vmem:[%s5775_s3 + $0x18c] ss:$16 sps:$4 sm:$0xff]   ;;  %v4352_v26 = vld [vmem:[%s5775_s3 + $0x180] ss:$16 sps:$4 sm:$0xff]  }
  0xd8   : > { %1835 = vmatprep.subr.bf16.mxu0 %v4263_v27  ;;  %2007 = vmatprep.subr.bf16.mxu1 %v4266_v28  ;;  %v4355_v27 = vld [vmem:[%s5775_s3 + $0x188] ss:$16 sps:$4 sm:$0xff]   ;;  %v4360_v28 = vld [vmem:[%s5775_s3 + $0x1a4] ss:$16 sps:$4 sm:$0xff]  }
  0xdb   : > { %1836 = vmatpush1.bf16.msra.mxu0 %v4261_v29  ;;  %2008 = vmatpush1.bf16.msra.mxu1 %v4264_v30  ;;  %v4363_v29 = vld [vmem:[%s5775_s3 + $0x1ac] ss:$16 sps:$4 sm:$0xff]   ;;  %v4358_v30 = vld [vmem:[%s5775_s3 + $0x1a0] ss:$16 sps:$4 sm:$0xff]  }
  0xdc   : > { %1837 = vmatprep.subr.bf16.mxu0 %v4269_v31  ;;  %2009 = vmatprep.subr.bf16.mxu1 %v4272_v32  ;;  %v4361_v31 = vld [vmem:[%s5775_s3 + $0x1a8] ss:$16 sps:$4 sm:$0xff]   ;;  %v4366_v32 = vld [vmem:[%s5775_s3 + $0x1c4] ss:$16 sps:$4 sm:$0xff]  }
  0xdf   : > { %1838 = vmatpush1.bf16.msra.mxu0 %v4267_v33  ;;  %2010 = vmatpush1.bf16.msra.mxu1 %v4270_v34  ;;  %v4369_v33 = vld [vmem:[%s5775_s3 + $0x1cc] ss:$16 sps:$4 sm:$0xff]   ;;  %v4364_v34 = vld [vmem:[%s5775_s3 + $0x1c0] ss:$16 sps:$4 sm:$0xff]  }
  0xe0   : > { %1839 = vmatprep.subr.bf16.mxu0 %v4275_v35  ;;  %2011 = vmatprep.subr.bf16.mxu1 %v4278_v36  ;;  %v4367_v35 = vld [vmem:[%s5775_s3 + $0x1c8] ss:$16 sps:$4 sm:$0xff]   ;;  %v4372_v36 = vld [vmem:[%s5775_s3 + $0x1e4] ss:$16 sps:$4 sm:$0xff]  }
  0xe3   : > { %1840 = vmatpush1.bf16.msra.mxu0 %v4273_v37  ;;  %2012 = vmatpush1.bf16.msra.mxu1 %v4276_v38  ;;  %v4375_v37 = vld [vmem:[%s5775_s3 + $0x1ec] ss:$16 sps:$4 sm:$0xff]   ;;  %v4370_v38 = vld [vmem:[%s5775_s3 + $0x1e0] ss:$16 sps:$4 sm:$0xff]  }
  0xe4   : > { %2842 = vmatprep.subr.bf16.mxu0 %v4282_v39  ;;  %2928 = vmatprep.subr.bf16.mxu1 %v4285_v40  ;;  %v4373_v39 = vld [vmem:[%s5775_s3 + $0x1e8] ss:$16 sps:$4 sm:$0xff]   ;;  %v4378_v40 = vld [vmem:[%s5775_s3 + $0x204] ss:$16 sps:$4 sm:$0xff]  }
  0xe6   : > { %1858 = vmatmul.mubr.bf16.vlgmr.msra.gmra.mrb[0].mxu0 %v4279_v41  ;;  %2030 = vmatmul.mubr.bf16.vlgmr.msra.gmra.mrb[0].mxu1 %v4279_v41  ;;  %v4381_v41 = vld [vmem:[%s5775_s3 + $0x20c] ss:$16 sps:$4 sm:$0xff]  }
  0xe7   : > { %2843 = vmatpush1.bf16.msra.mxu0 %v4280_v42  ;;  %2929 = vmatpush1.bf16.msra.mxu1 %v4283_v43  ;;  %v520_v42 = vlaneseq }
  0xe8   : > { %2844 = vmatprep.subr.bf16.mxu0 %v4288_v44  ;;  %2930 = vmatprep.subr.bf16.mxu1 %v4291_v45 }
  0xe9   : > { %v5448_v43 = vshrl.u32 %v520_v42, 7  ;;  %v4415_v42 = vld [vmem:[%s5775_s3 + $0x2c8] ss:$16 sps:$4 sm:$0xff]  }
  0xeb   : > { %2845 = vmatpush1.bf16.msra.mxu0 %v4286_v46  ;;  %2931 = vmatpush1.bf16.msra.mxu1 %v4289_v47  ;;  %v522_v44 = vsub.s32 0, %v5448_v43  ;;  %v530_v45 = vsub.s32 2, %v5448_v43  ;;  %v518_v46 = vld [vmem:[%s5774_s2] sm:$0xf]  ;;  %v526_v47 = vsub.s32 1, %v5448_v43 }
  0xec   : > { %2846 = vmatprep.subr.bf16.mxu0 %v4294_v48  ;;  %2932 = vmatprep.subr.bf16.mxu1 %v4297_v49  ;;  %v534_v48 = vsub.s32 3, %v5448_v43 }
  0xed   : > { %v523_v49 = vrot.slane %v518_v46, %v522_v44 }
  0xef   : > { %2847 = vmatpush1.bf16.msra.mxu0 %v4292_v50  ;;  %2933 = vmatpush1.bf16.msra.mxu1 %v4295_v51  ;;  %v531_v50 = vrot.slane %v518_v46, %v530_v45  ;;  %v527_v51 = vrot.slane %v518_v46, %v526_v47 }
  0xf0   : > { %2848 = vmatprep.subr.bf16.mxu0 %v4300_v52  ;;  %2934 = vmatprep.subr.bf16.mxu1 %v4303_v53  ;;  %v535_v52 = vrot.slane %v518_v46, %v534_v48  ;;  %v4420_v46 = vld [vmem:[%s5775_s3 + $0x2e4] ss:$16 sps:$4 sm:$0xff]  }
  0xf3   : > { %2849 = vmatpush1.bf16.msra.mxu0 %v4298_v54  ;;  %2935 = vmatpush1.bf16.msra.mxu1 %v4301_v55 }
  0xf4   : > { %2850 = vmatprep.subr.bf16.mxu0 %v4306_v56  ;;  %2936 = vmatprep.subr.bf16.mxu1 %v4309_v57 }
  0xf7   : > { %2851 = vmatpush1.bf16.msra.mxu0 %v4304_v58  ;;  %2937 = vmatpush1.bf16.msra.mxu1 %v4307_v59 }
  0xf8   : > { %2852 = vmatprep.subr.bf16.mxu0 %v4312_v60  ;;  %2938 = vmatprep.subr.bf16.mxu1 %v4315_v61 }
  0xfb   : > { %2853 = vmatpush1.bf16.msra.mxu0 %v4310_v62  ;;  %2939 = vmatpush1.bf16.msra.mxu1 %v4313_v63 }
  0xfc   : > { %2854 = vmatprep.subr.bf16.mxu0 %v4318_v0  ;;  %2940 = vmatprep.subr.bf16.mxu1 %v4321_v1 }
  0xff   : > { %2855 = vmatpush1.bf16.msra.mxu0 %v4316_v2  ;;  %2941 = vmatpush1.bf16.msra.mxu1 %v4319_v3 }
 0x100   : > { %2856 = vmatprep.subr.bf16.mxu0 %v4324_v4  ;;  %2942 = vmatprep.subr.bf16.mxu1 %v4327_v5 }
 0x103   : > { %2857 = vmatpush1.bf16.msra.mxu0 %v4322_v6  ;;  %2943 = vmatpush1.bf16.msra.mxu1 %v4325_v7 }
 0x104   : > { %2858 = vmatprep.subr.bf16.mxu0 %v4330_v8  ;;  %2944 = vmatprep.subr.bf16.mxu1 %v4333_v9 }
 0x107   : > { %2859 = vmatpush1.bf16.msra.mxu0 %v4328_v10  ;;  %2945 = vmatpush1.bf16.msra.mxu1 %v4331_v11 }
 0x108   : > { %2860 = vmatprep.subr.bf16.mxu0 %v4336_v12  ;;  %2946 = vmatprep.subr.bf16.mxu1 %v4339_v13 }
 0x10b   : > { %2861 = vmatpush1.bf16.msra.mxu0 %v4334_v14  ;;  %2947 = vmatpush1.bf16.msra.mxu1 %v4337_v15 }
 0x10c   : > { %2862 = vmatprep.subr.bf16.mxu0 %v4342_v16  ;;  %2948 = vmatprep.subr.bf16.mxu1 %v4345_v17  ;;  %v4376_v17 = vld [vmem:[%s5775_s3 + $0x200] ss:$16 sps:$4 sm:$0xff]  }
 0x10f   : > { %2863 = vmatpush1.bf16.msra.mxu0 %v4340_v18  ;;  %2949 = vmatpush1.bf16.msra.mxu1 %v4343_v19  ;;  %v4379_v18 = vld [vmem:[%s5775_s3 + $0x208] ss:$16 sps:$4 sm:$0xff]   ;;  %v4384_v19 = vld [vmem:[%s5775_s3 + $0x224] ss:$16 sps:$4 sm:$0xff]  }
 0x110   : > { %2864 = vmatprep.subr.bf16.mxu0 %v4348_v20  ;;  %2950 = vmatprep.subr.bf16.mxu1 %v4351_v21  ;;  %v4387_v20 = vld [vmem:[%s5775_s3 + $0x22c] ss:$16 sps:$4 sm:$0xff]   ;;  %v4382_v21 = vld [vmem:[%s5775_s3 + $0x220] ss:$16 sps:$4 sm:$0xff]  }
 0x113   : > { %2865 = vmatpush1.bf16.msra.mxu0 %v4346_v22  ;;  %2951 = vmatpush1.bf16.msra.mxu1 %v4349_v23  ;;  %v4385_v22 = vld [vmem:[%s5775_s3 + $0x228] ss:$16 sps:$4 sm:$0xff]   ;;  %v4390_v23 = vld [vmem:[%s5775_s3 + $0x244] ss:$16 sps:$4 sm:$0xff]  }
 0x114   : > { %2866 = vmatprep.subr.bf16.mxu0 %v4354_v24  ;;  %2952 = vmatprep.subr.bf16.mxu1 %v4357_v25  ;;  %v4393_v24 = vld [vmem:[%s5775_s3 + $0x24c] ss:$16 sps:$4 sm:$0xff]   ;;  %v4388_v25 = vld [vmem:[%s5775_s3 + $0x240] ss:$16 sps:$4 sm:$0xff]  }
 0x117   : > { %2867 = vmatpush1.bf16.msra.mxu0 %v4352_v26  ;;  %2953 = vmatpush1.bf16.msra.mxu1 %v4355_v27  ;;  %v4391_v26 = vld [vmem:[%s5775_s3 + $0x248] ss:$16 sps:$4 sm:$0xff]   ;;  %v4396_v27 = vld [vmem:[%s5775_s3 + $0x264] ss:$16 sps:$4 sm:$0xff]  }
 0x118   : > { %2868 = vmatprep.subr.bf16.mxu0 %v4360_v28  ;;  %2954 = vmatprep.subr.bf16.mxu1 %v4363_v29  ;;  %v4399_v28 = vld [vmem:[%s5775_s3 + $0x26c] ss:$16 sps:$4 sm:$0xff]   ;;  %v4394_v29 = vld [vmem:[%s5775_s3 + $0x260] ss:$16 sps:$4 sm:$0xff]  }
 0x11b   : > { %2869 = vmatpush1.bf16.msra.mxu0 %v4358_v30  ;;  %2955 = vmatpush1.bf16.msra.mxu1 %v4361_v31  ;;  %v4397_v30 = vld [vmem:[%s5775_s3 + $0x268] ss:$16 sps:$4 sm:$0xff]   ;;  %v4402_v31 = vld [vmem:[%s5775_s3 + $0x284] ss:$16 sps:$4 sm:$0xff]  }
 0x11c   : > { %2870 = vmatprep.subr.bf16.mxu0 %v4366_v32  ;;  %2956 = vmatprep.subr.bf16.mxu1 %v4369_v33  ;;  %v4405_v32 = vld [vmem:[%s5775_s3 + $0x28c] ss:$16 sps:$4 sm:$0xff]   ;;  %v4400_v33 = vld [vmem:[%s5775_s3 + $0x280] ss:$16 sps:$4 sm:$0xff]  }
 0x11f   : > { %2871 = vmatpush1.bf16.msra.mxu0 %v4364_v34  ;;  %2957 = vmatpush1.bf16.msra.mxu1 %v4367_v35  ;;  %v4403_v34 = vld [vmem:[%s5775_s3 + $0x288] ss:$16 sps:$4 sm:$0xff]   ;;  %v4408_v35 = vld [vmem:[%s5775_s3 + $0x2a4] ss:$16 sps:$4 sm:$0xff]  }
 0x120   : > { %2872 = vmatprep.subr.bf16.mxu0 %v4372_v36  ;;  %2958 = vmatprep.subr.bf16.mxu1 %v4375_v37  ;;  %v4411_v36 = vld [vmem:[%s5775_s3 + $0x2ac] ss:$16 sps:$4 sm:$0xff]   ;;  %v4406_v37 = vld [vmem:[%s5775_s3 + $0x2a0] ss:$16 sps:$4 sm:$0xff]  }
 0x123   : > { %2873 = vmatpush1.bf16.msra.mxu0 %v4370_v38  ;;  %2959 = vmatpush1.bf16.msra.mxu1 %v4373_v39  ;;  %v4409_v38 = vld [vmem:[%s5775_s3 + $0x2a8] ss:$16 sps:$4 sm:$0xff]   ;;  %v4414_v39 = vld [vmem:[%s5775_s3 + $0x2c4] ss:$16 sps:$4 sm:$0xff]  }
 0x124   : > { %2885 = vmatprep.subr.bf16.mxu0 %v4378_v40  ;;  %2971 = vmatprep.subr.bf16.mxu1 %v4381_v41  ;;  %v4417_v40 = vld [vmem:[%s5775_s3 + $0x2cc] ss:$16 sps:$4 sm:$0xff]   ;;  %v4412_v41 = vld [vmem:[%s5775_s3 + $0x2c0] ss:$16 sps:$4 sm:$0xff]  }
 0x1b9   : > { %v1859_v53 = vpop.f32.mrb[0].mxu0  ;;  %v2031_v54 = vpop.f32.mrb[0].mxu1 }
 0x1ba   : > { %v3876_v55 = vadd.f32 %v1859_v53, %v523_v49  ;;  %v3880_v56 = vadd.f32 %v2031_v54, %v531_v50  ;;  %v1861_v57 = vpop.f32.mrb[1].mxu0  ;;  %v2033_v58 = vpop.f32.mrb[1].mxu1  ;;  %v4429_v53 = vld [vmem:[%s5775_s3 + $0x30c] ss:$16 sps:$4 sm:$0xff]   ;;  %v4424_v54 = vld [vmem:[%s5775_s3 + $0x300] ss:$16 sps:$4 sm:$0xff]  }
 0x1bb   : > { %v3877_v59 = vadd.f32 %v1861_v57, %v527_v51  ;;  %v3881_v60 = vadd.f32 %v2033_v58, %v535_v52  ;;  %v1863_v61 = vpop.f32.mrb[2].mxu0  ;;  %v2035_v62 = vpop.f32.mrb[2].mxu1  ;;  %v4435_v57 = vld [vmem:[%s5775_s3 + $0x32c] ss:$16 sps:$4 sm:$0xff]   ;;  %v4430_v58 = vld [vmem:[%s5775_s3 + $0x320] ss:$16 sps:$4 sm:$0xff]  }
 0x1bc   : > { %v3878_v63 = vadd.f32 %v1863_v61, %v523_v49  ;;  %v3882_v0 = vadd.f32 %v2035_v62, %v531_v50  ;;  %v1865_v1 = vpop.f32.mrb[3].mxu0  ;;  %v2037_v2 = vpop.f32.mrb[3].mxu1  ;;  %v2040_v5 = vmax.f32 %v3876_v55, 0.0  ;;  %v2042_v6 = vmax.f32 %v3880_v56, 0.0  ;;  %v4423_v49 = vld [vmem:[%s5775_s3 + $0x2ec] ss:$16 sps:$4 sm:$0xff]  }
 0x1bd   : > { %v3879_v3 = vadd.f32 %v1865_v1, %v527_v51  ;;  %v3883_v4 = vadd.f32 %v2037_v2, %v535_v52  ;;  %v2041_v9 = vmax.f32 %v3877_v59, 0.0  ;;  %v2043_v10 = vmax.f32 %v3881_v60, 0.0  ;;  %v4418_v50 = vld [vmem:[%s5775_s3 + $0x2e0] ss:$16 sps:$4 sm:$0xff]   ;;  %v4421_v51 = vld [vmem:[%s5775_s3 + $0x2e8] ss:$16 sps:$4 sm:$0xff]  }
 0x1be   : > { %v2044_v7 = vmax.f32 %v3878_v63, 0.0  ;;  %v2046_v8 = vmax.f32 %v3882_v0, 0.0  ;;  %v4426_v52 = vld [vmem:[%s5775_s3 + $0x304] ss:$16 sps:$4 sm:$0xff]   ;;  %v4427_v55 = vld [vmem:[%s5775_s3 + $0x308] ss:$16 sps:$4 sm:$0xff]  }
 0x1bf   : > { %v2045_v11 = vmax.f32 %v3879_v3, 0.0  ;;  %v2047_v12 = vmax.f32 %v3883_v4, 0.0  ;;  %v4432_v56 = vld [vmem:[%s5775_s3 + $0x324] ss:$16 sps:$4 sm:$0xff]   ;;  %v4433_v59 = vld [vmem:[%s5775_s3 + $0x328] ss:$16 sps:$4 sm:$0xff]  }
 0x1c0   : > { %v2048_v13 = vpack.c.bf16 %v2044_v7, %v2040_v5  ;;  %v5465_v14 = vpack.c.bf16 %v2046_v8, %v2042_v6  ;;  %v4438_v60 = vld [vmem:[%s5775_s3 + $0x344] ss:$16 sps:$4 sm:$0xff]   ;;  %v4441_v61 = vld [vmem:[%s5775_s3 + $0x34c] ss:$16 sps:$4 sm:$0xff]   ;;  %v4436_v62 = vld [vmem:[%s5775_s3 + $0x340] ss:$16 sps:$4 sm:$0xff]  }
 0x1c1   : > { %v2049_v15 = vpack.c.bf16 %v2045_v11, %v2041_v9  ;;  %v2051_v16 = vpack.c.bf16 %v2047_v12, %v2043_v10  ;;  %v4439_v63 = vld [vmem:[%s5775_s3 + $0x348] ss:$16 sps:$4 sm:$0xff]   ;;  %v4444_v0 = vld [vmem:[%s5775_s3 + $0x364] ss:$16 sps:$4 sm:$0xff]   ;;  %v4447_v1 = vld [vmem:[%s5775_s3 + $0x36c] ss:$16 sps:$4 sm:$0xff]  }
 0x1c2   : > { %v4442_v2 = vld [vmem:[%s5775_s3 + $0x360] ss:$16 sps:$4 sm:$0xff]   ;;  %v4445_v3 = vld [vmem:[%s5775_s3 + $0x368] ss:$16 sps:$4 sm:$0xff]   ;;  %v4450_v4 = vld [vmem:[%s5775_s3 + $0x384] ss:$16 sps:$4 sm:$0xff]  }
 0x1c3   : > { %2874 = vmatprep.mubr.bf16.mxu0 %v2049_v15  ;;  %2960 = vmatprep.mubr.bf16.mxu1 %v2049_v15  ;;  %v4453_v5 = vld [vmem:[%s5775_s3 + $0x38c] ss:$16 sps:$4 sm:$0xff]   ;;  %v4448_v6 = vld [vmem:[%s5775_s3 + $0x380] ss:$16 sps:$4 sm:$0xff]   ;;  %v4451_v7 = vld [vmem:[%s5775_s3 + $0x388] ss:$16 sps:$4 sm:$0xff]  }
 0x1c4   : > { %2875 = vmatmul.mubr.bf16.vlgmr.msra.gmra.mrb[4].mxu0 %v2048_v13  ;;  %2961 = vmatmul.mubr.bf16.vlgmr.msra.gmra.mrb[4].mxu1 %v2048_v13  ;;  %v4456_v8 = vld [vmem:[%s5775_s3 + $0x3a4] ss:$16 sps:$4 sm:$0xff]   ;;  %v4459_v9 = vld [vmem:[%s5775_s3 + $0x3ac] ss:$16 sps:$4 sm:$0xff]   ;;  %v4454_v10 = vld [vmem:[%s5775_s3 + $0x3a0] ss:$16 sps:$4 sm:$0xff]  }
 0x1c5   : > { %2886 = vmatpush1.bf16.msra.mxu0 %v4376_v17  ;;  %2972 = vmatpush1.bf16.msra.mxu1 %v4379_v18  ;;  %v4457_v11 = vld [vmem:[%s5775_s3 + $0x3a8] ss:$16 sps:$4 sm:$0xff]   ;;  %v4462_v12 = vld [vmem:[%s5775_s3 + $0x3c4] ss:$16 sps:$4 sm:$0xff]   ;;  %v4465_v13 = vld [vmem:[%s5775_s3 + $0x3cc] ss:$16 sps:$4 sm:$0xff]  }
 0x1c6   : > { %2917 = vmatprep.mubr.bf16.mxu0 %v2051_v16  ;;  %3003 = vmatprep.mubr.bf16.mxu1 %v2051_v16  ;;  %v4460_v15 = vld [vmem:[%s5775_s3 + $0x3c0] ss:$16 sps:$4 sm:$0xff]   ;;  %v4463_v16 = vld [vmem:[%s5775_s3 + $0x3c8] ss:$16 sps:$4 sm:$0xff]   ;;  %v4468_v17 = vld [vmem:[%s5775_s3 + $0x3e4] ss:$16 sps:$4 sm:$0xff]  }
 0x1c7   : > { %2887 = vmatprep.subr.bf16.mxu0 %v4384_v19  ;;  %2973 = vmatprep.subr.bf16.mxu1 %v4387_v20  ;;  %v4471_v18 = vld [vmem:[%s5775_s3 + $0x3ec] ss:$16 sps:$4 sm:$0xff]   ;;  %v4466_v19 = vld [vmem:[%s5775_s3 + $0x3e0] ss:$16 sps:$4 sm:$0xff]   ;;  %v4469_v20 = vld [vmem:[%s5775_s3 + $0x3e8] ss:$16 sps:$4 sm:$0xff]  }
 0x1c9   : > { %2888 = vmatpush1.bf16.msra.mxu0 %v4382_v21  ;;  %2974 = vmatpush1.bf16.msra.mxu1 %v4385_v22  ;;  %v4472_v21 = vld [vmem:[%s5777_s5 + $0x40] sm:$0xff]  }
 0x1ca   : > { %2889 = vmatprep.subr.bf16.mxu0 %v4390_v23  ;;  %2975 = vmatprep.subr.bf16.mxu1 %v4393_v24  ;;  %v4473_v22 = vld [vmem:[%s5777_s5 + $0xc0] sm:$0xff]  }
 0x1cb   : > { %v4474_v23 = vld [vmem:[%s5777_s5] sm:$0xff]  }
 0x1cc   : > { %v4475_v24 = vld [vmem:[%s5777_s5 + $0x80] sm:$0xff]  }
 0x1cd   : > { %2890 = vmatpush1.bf16.msra.mxu0 %v4388_v25  ;;  %2976 = vmatpush1.bf16.msra.mxu1 %v4391_v26  ;;  %v4476_v25 = vld [vmem:[%s5777_s5 + $0x48] sm:$0xff]  }
 0x1ce   : > { %2891 = vmatprep.subr.bf16.mxu0 %v4396_v27  ;;  %2977 = vmatprep.subr.bf16.mxu1 %v4399_v28  ;;  %v4477_v26 = vld [vmem:[%s5777_s5 + $0xc8] sm:$0xff]  }
 0x1cf   : > { %v4478_v27 = vld [vmem:[%s5777_s5 + $0x8] sm:$0xff]  }
 0x1d0   : > { %v4479_v28 = vld [vmem:[%s5777_s5 + $0x88] sm:$0xff]  }
 0x1d1   : > { %2892 = vmatpush1.bf16.msra.mxu0 %v4394_v29  ;;  %2978 = vmatpush1.bf16.msra.mxu1 %v4397_v30  ;;  %v4480_v29 = vld [vmem:[%s5777_s5 + $0x50] sm:$0xff]  }
 0x1d2   : > { %2893 = vmatprep.subr.bf16.mxu0 %v4402_v31  ;;  %2979 = vmatprep.subr.bf16.mxu1 %v4405_v32  ;;  %v4482_v30 = vld [vmem:[%s5777_s5 + $0x10] sm:$0xff]   ;;  %v4484_v32 = vld [vmem:[%s5777_s5 + $0x58] sm:$0xff]  }
 0x1d3   : > { %v4483_v31 = vld [vmem:[%s5777_s5 + $0x90] sm:$0xff]  }
 0x1d5   : > { %2894 = vmatpush1.bf16.msra.mxu0 %v4400_v33  ;;  %2980 = vmatpush1.bf16.msra.mxu1 %v4403_v34  ;;  %v4485_v33 = vld [vmem:[%s5777_s5 + $0xd8] sm:$0xff]  }
 0x1d6   : > { %2895 = vmatprep.subr.bf16.mxu0 %v4408_v35  ;;  %2981 = vmatprep.subr.bf16.mxu1 %v4411_v36  ;;  %v4486_v34 = vld [vmem:[%s5777_s5 + $0x18] sm:$0xff]   ;;  %v4488_v36 = vld [vmem:[%s5777_s5 + $0x60] sm:$0xff]  }
 0x1d7   : > { %v4487_v35 = vld [vmem:[%s5777_s5 + $0x98] sm:$0xff]  }
 0x1d9   : > { %2896 = vmatpush1.bf16.msra.mxu0 %v4406_v37  ;;  %2982 = vmatpush1.bf16.msra.mxu1 %v4409_v38  ;;  %v4489_v37 = vld [vmem:[%s5777_s5 + $0xe0] sm:$0xff]  }
 0x1da   : > { %2897 = vmatprep.subr.bf16.mxu0 %v4414_v39  ;;  %2983 = vmatprep.subr.bf16.mxu1 %v4417_v40  ;;  %v4490_v38 = vld [vmem:[%s5777_s5 + $0x20] sm:$0xff]   ;;  %v4492_v40 = vld [vmem:[%s5777_s5 + $0x68] sm:$0xff]  }
 0x1db   : > { %v4491_v39 = vld [vmem:[%s5777_s5 + $0xa0] sm:$0xff]  }
 0x1dd   : > { %2898 = vmatpush1.bf16.msra.mxu0 %v4412_v41  ;;  %2984 = vmatpush1.bf16.msra.mxu1 %v4415_v42  ;;  %v4493_v41 = vld [vmem:[%s5777_s5 + $0xe8] sm:$0xff]  }
 0x1de   : > { %2899 = vmatprep.subr.bf16.mxu0 %v4420_v46  ;;  %2985 = vmatprep.subr.bf16.mxu1 %v4423_v49  ;;  %v4494_v42 = vld [vmem:[%s5777_s5 + $0x28] sm:$0xff]   ;;  %v4496_v49 = vld [vmem:[%s5777_s5 + $0x70] sm:$0xff]  }
 0x1df   : > { %v4495_v46 = vld [vmem:[%s5777_s5 + $0xa8] sm:$0xff]  }
 0x1e1   : > { %2900 = vmatpush1.bf16.msra.mxu0 %v4418_v50  ;;  %2986 = vmatpush1.bf16.msra.mxu1 %v4421_v51  ;;  %v4497_v50 = vld [vmem:[%s5777_s5 + $0xf0] sm:$0xff]  }
 0x1e2   : > { %2901 = vmatprep.subr.bf16.mxu0 %v4426_v52  ;;  %2987 = vmatprep.subr.bf16.mxu1 %v4429_v53  ;;  %v4498_v51 = vld [vmem:[%s5777_s5 + $0x30] sm:$0xff]   ;;  %v4500_v53 = vld [vmem:[%s5777_s5 + $0x78] sm:$0xff]  }
 0x1e3   : > { %v4499_v52 = vld [vmem:[%s5777_s5 + $0xb0] sm:$0xff]  }
 0x1e5   : > { %2902 = vmatpush1.bf16.msra.mxu0 %v4424_v54  ;;  %2988 = vmatpush1.bf16.msra.mxu1 %v4427_v55  ;;  %v4501_v54 = vld [vmem:[%s5777_s5 + $0xf8] sm:$0xff]  }
 0x1e6   : > { %2903 = vmatprep.subr.bf16.mxu0 %v4432_v56  ;;  %2989 = vmatprep.subr.bf16.mxu1 %v4435_v57  ;;  %v4502_v55 = vld [vmem:[%s5777_s5 + $0x38] sm:$0xff]   ;;  %v2180_v57 = vld [vmem:[%s5776_s4] sm:$0xf] }
 0x1e7   : > { %v4503_v56 = vld [vmem:[%s5777_s5 + $0xb8] sm:$0xff]  }
 0x1e9   : > { %2904 = vmatpush1.bf16.msra.mxu0 %v4430_v58  ;;  %2990 = vmatpush1.bf16.msra.mxu1 %v4433_v59  ;;  %v2185_v58 = vrot.slane %v2180_v57, %v522_v44  ;;  %v2193_v59 = vrot.slane %v2180_v57, %v530_v45 }
 0x1ea   : > { %2905 = vmatprep.subr.bf16.mxu0 %v4438_v60  ;;  %2991 = vmatprep.subr.bf16.mxu1 %v4441_v61  ;;  %v2189_v60 = vrot.slane %v2180_v57, %v526_v47  ;;  %v2197_v61 = vrot.slane %v2180_v57, %v534_v48 }
 0x1ed   : > { %2906 = vmatpush1.bf16.msra.mxu0 %v4436_v62  ;;  %2992 = vmatpush1.bf16.msra.mxu1 %v4439_v63 }
 0x1ee   : > { %2907 = vmatprep.subr.bf16.mxu0 %v4444_v0  ;;  %2993 = vmatprep.subr.bf16.mxu1 %v4447_v1 }
 0x1f1   : > { %2908 = vmatpush1.bf16.msra.mxu0 %v4442_v2  ;;  %2994 = vmatpush1.bf16.msra.mxu1 %v4445_v3 }
 0x1f2   : > { %2909 = vmatprep.subr.bf16.mxu0 %v4450_v4  ;;  %2995 = vmatprep.subr.bf16.mxu1 %v4453_v5 }
 0x1f5   : > { %2910 = vmatpush1.bf16.msra.mxu0 %v4448_v6  ;;  %2996 = vmatpush1.bf16.msra.mxu1 %v4451_v7 }
 0x1f6   : > { %2911 = vmatprep.subr.bf16.mxu0 %v4456_v8  ;;  %2997 = vmatprep.subr.bf16.mxu1 %v4459_v9 }
 0x1f9   : > { %2912 = vmatpush1.bf16.msra.mxu0 %v4454_v10  ;;  %2998 = vmatpush1.bf16.msra.mxu1 %v4457_v11 }
 0x1fa   : > { %2913 = vmatprep.subr.bf16.mxu0 %v4462_v12  ;;  %2999 = vmatprep.subr.bf16.mxu1 %v4465_v13 }
 0x1fd   : > { %2914 = vmatpush1.bf16.msra.mxu0 %v4460_v15  ;;  %3000 = vmatpush1.bf16.msra.mxu1 %v4463_v16 }
 0x1fe   : > { %2915 = vmatprep.subr.bf16.mxu0 %v4468_v17  ;;  %3001 = vmatprep.subr.bf16.mxu1 %v4471_v18 }
 0x201   : > { %2916 = vmatpush1.bf16.msra.mxu0 %v4466_v19  ;;  %3002 = vmatpush1.bf16.msra.mxu1 %v4469_v20 }
 0x202   : > { %3832 = vmatprep.subr.bf16.mxu0 %v4472_v21  ;;  %3854 = vmatprep.subr.bf16.mxu1 %v4473_v22 }
 0x204   : > { %2918 = vmatmul.mubr.bf16.vlgmr.msra.gmra.mrb[4].mxu0 %v5465_v14  ;;  %3004 = vmatmul.mubr.bf16.vlgmr.msra.gmra.mrb[4].mxu1 %v5465_v14  ;;  %v4481_v14 = vld [vmem:[%s5777_s5 + $0xd0] sm:$0xff]  }
 0x205   : > { %3833 = vmatpush3.bf16.msra.mxu0 %v4474_v23  ;;  %3855 = vmatpush3.bf16.msra.mxu1 %v4475_v24  ;;  %v3797_v24 = vld [vmem:[%s5778_s6] ss:$0 sm:$0xff] }
 0x206   : > { %3834 = vmatprep.subr.bf16.mxu0 %v4476_v25  ;;  %3856 = vmatprep.subr.bf16.mxu1 %v4477_v26 }
 0x209   : > { %3835 = vmatpush3.bf16.msra.mxu0 %v4478_v27  ;;  %3857 = vmatpush3.bf16.msra.mxu1 %v4479_v28 }
 0x20a   : > { %3836 = vmatprep.subr.bf16.mxu0 %v4480_v29  ;;  %3858 = vmatprep.subr.bf16.mxu1 %v4481_v14 }
 0x20d   : > { %3837 = vmatpush3.bf16.msra.mxu0 %v4482_v30  ;;  %3859 = vmatpush3.bf16.msra.mxu1 %v4483_v31 }
 0x20e   : > { %3838 = vmatprep.subr.bf16.mxu0 %v4484_v32  ;;  %3860 = vmatprep.subr.bf16.mxu1 %v4485_v33 }
 0x211   : > { %3839 = vmatpush3.bf16.msra.mxu0 %v4486_v34  ;;  %3861 = vmatpush3.bf16.msra.mxu1 %v4487_v35 }
 0x212   : > { %3840 = vmatprep.subr.bf16.mxu0 %v4488_v36  ;;  %3862 = vmatprep.subr.bf16.mxu1 %v4489_v37 }
 0x215   : > { %3841 = vmatpush3.bf16.msra.mxu0 %v4490_v38  ;;  %3863 = vmatpush3.bf16.msra.mxu1 %v4491_v39 }
 0x216   : > { %3842 = vmatprep.subr.bf16.mxu0 %v4492_v40  ;;  %3864 = vmatprep.subr.bf16.mxu1 %v4493_v41 }
 0x219   : > { %3843 = vmatpush3.bf16.msra.mxu0 %v4494_v42  ;;  %3865 = vmatpush3.bf16.msra.mxu1 %v4495_v46 }
 0x21a   : > { %3844 = vmatprep.subr.bf16.mxu0 %v4496_v49  ;;  %3866 = vmatprep.subr.bf16.mxu1 %v4497_v50 }
 0x21d   : > { %3845 = vmatpush3.bf16.msra.mxu0 %v4498_v51  ;;  %3867 = vmatpush3.bf16.msra.mxu1 %v4499_v52 }
 0x21e   : > { %3846 = vmatprep.subr.bf16.mxu0 %v4500_v53  ;;  %3868 = vmatprep.subr.bf16.mxu1 %v4501_v54 }
 0x221   : > { %3847 = vmatpush3.bf16.msra.mxu0 %v4502_v55  ;;  %3869 = vmatpush3.bf16.msra.mxu1 %v4503_v56 }
 0x2d7   : > { %v2919_v62 = vpop.f32.mrb[4].mxu0  ;;  %v3005_v63 = vpop.f32.mrb[4].mxu1 }
 0x2d8   : > { %v3884_v0 = vadd.f32 %v2919_v62, %v2185_v58  ;;  %v3888_v1 = vadd.f32 %v3005_v63, %v2193_v59  ;;  %v2921_v2 = vpop.f32.mrb[5].mxu0  ;;  %v3007_v3 = vpop.f32.mrb[5].mxu1 }
 0x2d9   : > { %v3885_v4 = vadd.f32 %v2921_v2, %v2189_v60  ;;  %v3889_v5 = vadd.f32 %v3007_v3, %v2197_v61  ;;  %v2923_v6 = vpop.f32.mrb[6].mxu0  ;;  %v3009_v7 = vpop.f32.mrb[6].mxu1 }
 0x2da   : > { %v3886_v44 = vadd.f32 %v2923_v6, %v2185_v58  ;;  %v3890_v8 = vadd.f32 %v3009_v7, %v2193_v59  ;;  %v2925_v9 = vpop.f32.mrb[7].mxu0  ;;  %v3011_v45 = vpop.f32.mrb[7].mxu1  ;;  %v3014_v47 = vmax.f32 %v3884_v0, 0.0  ;;  %v3016_v12 = vmax.f32 %v3888_v1, 0.0 }
 0x2db   : > { %v3887_v10 = vadd.f32 %v2925_v9, %v2189_v60  ;;  %v3891_v11 = vadd.f32 %v3011_v45, %v2197_v61  ;;  %v3015_v13 = vmax.f32 %v3885_v4, 0.0  ;;  %v3017_v15 = vmax.f32 %v3889_v5, 0.0 }
 0x2dc   : > { %v3018_v43 = vmax.f32 %v3886_v44, 0.0  ;;  %v3020_v48 = vmax.f32 %v3890_v8, 0.0 }
 0x2dd   : > { %v3019_v16 = vmax.f32 %v3887_v10, 0.0  ;;  %v3021_v17 = vmax.f32 %v3891_v11, 0.0 }
 0x2de   : > { %v3022_v18 = vpack.c.bf16 %v3018_v43, %v3014_v47  ;;  %v3024_v19 = vpack.c.bf16 %v3020_v48, %v3016_v12 }
 0x2df   : > { %v3023_v20 = vpack.c.bf16 %v3019_v16, %v3015_v13  ;;  %v3025_v21 = vpack.c.bf16 %v3021_v17, %v3017_v15 }
 0x2e1   : > { %3321 = vmatprep.mubr.bf16.mxu0 %v3023_v20  ;;  %3362 = vmatprep.mubr.bf16.mxu1 %v3025_v21 }
 0x2e2   : > { %3322 = vmatmul.mubr.bf16.vlgmr.msra.gmra.mrb[8].mxu0 %v3022_v18  ;;  %3363 = vmatmul.mubr.bf16.vlgmr.msra.gmra.mrb[8].mxu1 %v3024_v19 }
 0x3b5   : > { %v3848_v22 = vpop.f32.mrb[8].mxu0  ;;  %v3870_v23 = vpop.f32.mrb[8].mxu1 }
 0x3b6   : > { %v3849_v25 = vpop.f32.mrb[9].mxu0  ;;  %v3871_v26 = vpop.f32.mrb[9].mxu1 }
 0x3b7   : > { %v3850_v27 = vadd.f32 %v3849_v25, %v3848_v22  ;;  %v3872_v28 = vadd.f32 %v3871_v26, %v3870_v23  ;;  %v3851_v29 = vpop.f32.mrb[10].mxu0  ;;  %v3873_v14 = vpop.f32.mrb[10].mxu1 }
 0x3b8   : > { %v3852_v30 = vpop.f32.mrb[11].mxu0  ;;  %v3874_v31 = vpop.f32.mrb[11].mxu1 }
 0x3b9   : > { %v3324_v32 = vadd.f32 %v3850_v27, %v3797_v24  ;;  %v3853_v33 = vadd.f32 %v3852_v30, %v3851_v29  ;;  %v3875_v34 = vadd.f32 %v3874_v31, %v3873_v14 }
 0x3bb   : > { %v3365_v35 = vadd.f32 %v3872_v28, %v3324_v32  ;;  %v3327_v36 = vadd.f32 %v3853_v33, %v3797_v24 }
 0x3bd   : > { %3371 = vst [vmem:[%s283_s27] sm:$0xff] %v3365_v35  ;;  %v3368_v37 = vadd.f32 %v3875_v34, %v3327_v36 }
 0x3bf   : > { %3372 = vst [vmem:[%s283_s27 + $0x8] sm:$0xff] %v3368_v37 }
 0x3c0 PF: > { %s17_s24 = sadd.s32 1, %s4510_s24  }
 0x3c1   : > { %p14_p4 = scmp.ge.s32.totalorder %s17_s24, 4  }
 0x3c3   :  { %16 = sbr.rel (!%p14_p4) target bundleno = 1 (0x1), region = 78 }

</bundles_post_ra>
